<compile_context>
chip_gen: v7x
topology: tpu7x:2x2x1
jax: 0.10.0
libtpu: 0.0.40
codegen_flags: <defaults>
</compile_context>

<pallas_src>
import functools

import jax
import jax.numpy as jnp
from jax import lax
from jax.experimental import pallas as pl
from jax.experimental.pallas import tpu as pltpu


def _cdiv(a, b):
    return -(-a // b)


def _round_up(x, m):
    return _cdiv(x, m) * m


def _conv_bn_relu_kernel(x_cur_ref, x_nxt_ref, w_ref, shift_ref, o_ref, *,
                         tap_offsets, tp, apply_relu):
    """One grid step == one (batch element, flat spatial tile).

    x_cur_ref : (1, Cin, TP)       bf16 flat-spatial tile s
    x_nxt_ref : (1, Cin, TP)       bf16 flat-spatial tile s+1 (tap halo source)
    w_ref     : (KH*KW, Cout, Cin) bf16 per-tap weights, BN scale pre-folded
    shift_ref : (Cout, 1)          f32  folded BN shift (+ conv bias)
    o_ref     : (1, Cout, TP)      output tile (lane-dense, 128-multiple TP)
    """
    cur = x_cur_ref[0]                                   # (Cin, TP)
    nxt = x_nxt_ref[0]                                   # (Cin, TP)
    # TP is a multiple of 128, so this concat is lane-tile aligned.
    slab = jnp.concatenate([cur, nxt], axis=1)           # (Cin, 2*TP)

    acc = None
    for t, off in enumerate(tap_offsets):
        # win[:, x] = flat_input[tile_start + x + off]; 0 <= off <= TP, so the
        # window always fits inside [cur | nxt].
        win = cur if off == 0 else slab[:, off:off + tp]
        part = jnp.dot(w_ref[t], win, preferred_element_type=jnp.float32)
        acc = part if acc is None else acc + part        # (Cout, TP) f32

    y = acc + shift_ref[...]                             # per-channel shift
    if apply_relu:
        y = jnp.maximum(y, 0.0)
    o_ref[0] = y.astype(o_ref.dtype)


def _pick_vmem_limit():
    """Explicit scoped-VMEM budget, generation-aware but conservative."""
    phys = 64 << 20                      # assume the smallest (v7x per-core) VMEM
    try:
        info = pltpu.get_tpu_info()
        phys = int(getattr(info, "vmem_capacity_bytes", phys)) or phys
    except Exception:
        pass
    return int(min(48 << 20, phys * 7 // 10))


def _vmem_step_bytes(tp, cin, cout, ksz, in_bytes, out_bytes, single_buffer):
    # Pipelined (double-buffered by Pallas): cur + nxt inputs, output tile.
    pipelined = 2 * (2 * cin * tp * in_bytes + cout * tp * out_bytes)
    # Grid-invariant operands (weights + shift).
    invariant = (ksz * cout * cin * in_bytes + cout * 4) * (1 if single_buffer else 2)
    # In-kernel temporaries: slab (Cin, 2*TP), window copies, f32 accumulator.
    temps = 4 * cin * tp * in_bytes + cout * tp * 4
    return pipelined + invariant + temps


def _choose_spatial_tile(p0, t_max, n_batch, cin, cout, ksz, in_bytes,
                         out_bytes, budget_bytes, single_buffer):
    """Largest 128-multiple flat-spatial tile TP such that
       - TP >= t_max (the tap halo fits inside the next tile),
       - the estimated per-step VMEM footprint fits the budget,
       - padding waste stays modest,
       and >= 2 total grid steps whenever possible (v7x has 2 TensorCores)."""
    t_min_r = _round_up(max(t_max, 1), 128)
    tp_max = max(_round_up(max(p0, t_max), 128), t_min_r)
    cap = min(tp_max, 4096)

    def fits(c):
        return _vmem_step_bytes(c, cin, cout, ksz, in_bytes, out_bytes,
                                single_buffer) <= budget_bytes

    def waste_ok(c):
        return _cdiv(p0, c) * c - p0 <= max(p0 // 8, 128)

    candidates = list(range(cap, t_min_r - 1, -128))
    tp = None
    for c in candidates:
        if fits(c) and waste_ok(c):
            tp = c
            break
    if tp is None:
        for c in candidates:
            if fits(c):
                tp = c
                break
    if tp is None:            # correctness over budget (very wide images)
        tp = t_min_r

    # Guarantee >= 2 grid steps along the "parallel" axes when possible so both
    # v7x TensorCores get work.
    if n_batch * _cdiv(p0, tp) < 2:
        for c in range(tp - 128, t_min_r - 1, -128):
            if fits(c) and n_batch * _cdiv(p0, c) >= 2:
                tp = c
                break
    return tp


def basic_conv_forward(x_nchw, weight_oihw, gamma=None, beta=None,
                       running_mean=None, running_var=None, bias=None, *,
                       stride=1, padding=0, dilation=1, groups=1,
                       eps=1e-5, relu=True, bn=True,
                       compute_dtype=jnp.bfloat16, out_dtype=jnp.float32,
                       single_buffer_invariants=True):
    """BasicConv forward (NCHW in / NCHW out): conv2d -> BN(eval, folded) -> ReLU.

    compute_dtype=jnp.float32 is the escape hatch if bit-closeness to the
    fp32 torch module is required; out_dtype=jnp.bfloat16 halves the output
    HBM write traffic when the consumer accepts bf16.
    """
    if stride != 1 or dilation != 1 or groups != 1:
        raise NotImplementedError(
            "Pallas BasicConv kernel supports stride=1, dilation=1, groups=1.")
    n, cin, h, w = x_nchw.shape
    cout, cin_w, kh, kw = weight_oihw.shape
    assert cin == cin_w, (cin, cin_w)

    hp, wp = h + 2 * padding, w + 2 * padding
    oh, ow = hp - kh + 1, wp - kw + 1
    if oh <= 0 or ow <= 0:
        raise ValueError("Non-positive output spatial extent.")
    ksz = kh * kw

    # ---- Fold conv bias + eval-mode BatchNorm into (scale, shift). ----
    bias_v = (jnp.zeros((cout,), jnp.float32) if bias is None
              else bias.astype(jnp.float32))
    if bn:
        if any(p is None for p in (gamma, beta, running_mean, running_var)):
            raise ValueError(
                "bn=True requires gamma/beta/running_mean/running_var.")
        inv_std = lax.rsqrt(running_var.astype(jnp.float32) + eps)
        scale = gamma.astype(jnp.float32) * inv_std
        shift = (beta.astype(jnp.float32)
                 + (bias_v - running_mean.astype(jnp.float32)) * scale)
    else:
        scale = jnp.ones((cout,), jnp.float32)
        shift = bias_v

    # (Cout, Cin, KH, KW) -> (KH*KW, Cout, Cin), BN scale folded, cast to bf16.
    w_taps = (jnp.transpose(
        weight_oihw.astype(jnp.float32) * scale[:, None, None, None],
        (2, 3, 0, 1)).reshape(ksz, cout, cin).astype(compute_dtype))

    # ---- Flatten the zero-padded activation; taps become flat lane offsets.
    # Output is computed in the "Wp-wide frame": out_flat[r*Wp + c] is valid for
    # c < OW; columns [OW, Wp) are garbage and sliced away afterwards.
    tap_offsets = tuple(i * wp + j for i in range(kh) for j in range(kw))
    t_max = tap_offsets[-1]                       # (kh-1)*wp + kw-1
    p0 = oh * wp                                  # flat output frame length

    in_bytes = jnp.dtype(compute_dtype).itemsize
    out_bytes = jnp.dtype(out_dtype).itemsize
    vmem_limit = _pick_vmem_limit()
    tp = _choose_spatial_tile(p0, t_max, n, cin, cout, ksz, in_bytes,
                              out_bytes, vmem_limit // 2,
                              single_buffer_invariants)
    n_tiles = _cdiv(p0, tp)
    p_pad = n_tiles * tp
    l_pad = (n_tiles + 1) * tp                    # one extra all-zero halo tile

    x_pad = jnp.pad(x_nchw, ((0, 0), (0, 0), (padding, padding),
                             (padding, padding)))
    x_flat = x_pad.reshape(n, cin, hp * wp).astype(compute_dtype)
    x_flat = jnp.pad(x_flat, ((0, 0), (0, 0), (0, l_pad - hp * wp)))

    kernel = functools.partial(_conv_bn_relu_kernel, tap_offsets=tap_offsets,
                               tp=tp, apply_relu=relu)

    def _build(single_buffer):
        if single_buffer:
            w_spec = pl.BlockSpec((ksz, cout, cin), lambda b, s: (0, 0, 0),
                                  pipeline_mode=pl.Buffered(1))
            s_spec = pl.BlockSpec((cout, 1), lambda b, s: (0, 0),
                                  pipeline_mode=pl.Buffered(1))
        else:
            w_spec = pl.BlockSpec((ksz, cout, cin), lambda b, s: (0, 0, 0))
            s_spec = pl.BlockSpec((cout, 1), lambda b, s: (0, 0))
        return pl.pallas_call(
            kernel,
            out_shape=jax.ShapeDtypeStruct((n, cout, p_pad), out_dtype),
            grid_spec=pltpu.PrefetchScalarGridSpec(
                num_scalar_prefetch=0,
                grid=(n, n_tiles),
                in_specs=[
                    pl.BlockSpec((1, cin, tp), lambda b, s: (b, 0, s)),
                    pl.BlockSpec((1, cin, tp), lambda b, s: (b, 0, s + 1)),
                    w_spec,
                    s_spec,
                ],
                out_specs=pl.BlockSpec((1, cout, tp), lambda b, s: (b, 0, s)),
            ),
            compiler_params=pltpu.CompilerParams(
                dimension_semantics=("parallel", "parallel"),
                vmem_limit_bytes=vmem_limit),
        )

    args = (x_flat, x_flat, w_taps, shift.reshape(cout, 1))
    try:
        out = jax.block_until_ready(_build(single_buffer_invariants)(*args))
    except Exception:
        if not single_buffer_invariants:
            raise
        # Fallback: default double-buffered invariant operands.
        out = jax.block_until_ready(_build(False)(*args))

    # (N, Cout, P_pad) -> (N, Cout, OH, OW): drop the flat lane padding and the
    # Wp-frame garbage columns.
    out = out[:, :, :p0].reshape(n, cout, oh, wp)[:, :, :, :ow]
    return out


def _reference(x, weight, gamma, beta, running_mean, running_var, *,
               padding, eps=1e-5, compute_dtype=jnp.bfloat16):
    """Reference with the same bf16 operand rounding (f32 accumulation)."""
    inv_std = lax.rsqrt(running_var + eps)
    scale = gamma * inv_std
    shift = beta - running_mean * scale
    w_folded = ((weight * scale[:, None, None, None])
                .astype(compute_dtype).astype(jnp.float32))
    x_c = x.astype(compute_dtype).astype(jnp.float32)
    y = lax.conv_general_dilated(
        x_c, w_folded, window_strides=(1, 1),
        padding=((padding, padding), (padding, padding)),
        dimension_numbers=("NCHW", "OIHW", "NCHW"),
        precision=lax.Precision.HIGHEST)
    y = y + shift[None, :, None, None]
    return jnp.maximum(y, 0.0)


if __name__ == "__main__":
    # BasicConv(in_planes=4, out_planes=8, kernel_size=3, padding=1)
    N, CIN, H, W = 2, 4, 16, 16
    COUT, K, PAD = 8, 3, 1

    key = jax.random.PRNGKey(0)
    kx, kw_, kg, kb = jax.random.split(key, 4)

    x = jax.random.normal(kx, (N, CIN, H, W), dtype=jnp.float32)
    weight = jax.random.normal(kw_, (COUT, CIN, K, K), dtype=jnp.float32) * 0.1
    gamma = jax.random.normal(kg, (COUT,), dtype=jnp.float32) * 0.1 + 1.0
    beta = jax.random.normal(kb, (COUT,), dtype=jnp.float32) * 0.1
    running_mean = jnp.zeros((COUT,), jnp.float32)
    running_var = jnp.ones((COUT,), jnp.float32)

    ref = _reference(x, weight, gamma, beta, running_mean, running_var,
                     padding=PAD)

    # f32 output path (tight check against the reference).
    out = basic_conv_forward(x, weight, gamma, beta, running_mean, running_var,
                             padding=PAD, out_dtype=jnp.float32)
    out = jax.block_until_ready(out)
    assert out.shape == (N, COUT, H, W), out.shape
    max_err = float(jnp.max(jnp.abs(out - ref)))
    assert jnp.allclose(out, ref, atol=1e-3, rtol=1e-3), max_err

    # bf16 output path (halves output HBM write traffic; loose check).
    out_bf16 = basic_conv_forward(x, weight, gamma, beta, running_mean,
                                  running_var, padding=PAD,
                                  out_dtype=jnp.bfloat16)
    out_bf16 = jax.block_until_ready(out_bf16)
    assert out_bf16.dtype == jnp.bfloat16 and out_bf16.shape == (N, COUT, H, W)
    assert jnp.allclose(out_bf16.astype(jnp.float32), ref,
                        atol=5e-2, rtol=5e-2)

    print("KERNEL_OK")
</pallas_src>

<mosaic_0001>
module attributes {stable_mosaic.version = 11 : i64} {
  func.func @_conv_bn_relu_kernel(%arg0: i32, %arg1: i32, %arg2: memref<1x4x384xbf16, #tpu.memory_space<vmem>>, %arg3: memref<1x4x384xbf16, #tpu.memory_space<vmem>>, %arg4: memref<9x8x4xbf16, #tpu.memory_space<vmem>>, %arg5: memref<8x1xf32, #tpu.memory_space<vmem>>, %arg6: memref<1x8x384xf32, #tpu.memory_space<vmem>>) attributes {dimension_semantics = [#tpu.dimension_semantics<parallel>, #tpu.dimension_semantics<parallel>], iteration_bounds = array<i64: 2, 1>, scalar_prefetch = 0 : i64, scratch_operands = 0 : i64, tpu.core_type = #tpu.core_type<tc>, window_params = [{transform_indices = @transform_0, window_bounds = array<i64: 1, 4, 384>}, {transform_indices = @transform_1, window_bounds = array<i64: 1, 4, 384>}, {pipeline_mode = #tpu.pipeline_mode<synchronous>, transform_indices = @transform_2, window_bounds = array<i64: 9, 8, 4>}, {pipeline_mode = #tpu.pipeline_mode<synchronous>, transform_indices = @transform_3, window_bounds = array<i64: 8, 1>}, {transform_indices = @transform_4, window_bounds = array<i64: 1, 8, 384>}]} {
    %c0 = arith.constant 0 : index
    %c0_0 = arith.constant 0 : index
    %c0_1 = arith.constant 0 : index
    %0 = vector.load %arg2[%c0, %c0_0, %c0_1] : memref<1x4x384xbf16, #tpu.memory_space<vmem>>, vector<1x4x384xbf16>
    %1 = vector.shape_cast %0 : vector<1x4x384xbf16> to vector<4x384xbf16>
    %c0_2 = arith.constant 0 : index
    %c0_3 = arith.constant 0 : index
    %c0_4 = arith.constant 0 : index
    %2 = vector.load %arg3[%c0_2, %c0_3, %c0_4] : memref<1x4x384xbf16, #tpu.memory_space<vmem>>, vector<1x4x384xbf16>
    %3 = vector.shape_cast %2 : vector<1x4x384xbf16> to vector<4x384xbf16>
    %4 = tpu.concatenate %1, %3 in 1 : vector<4x384xbf16>, vector<4x384xbf16> -> vector<4x768xbf16>
    %c0_5 = arith.constant 0 : index
    %c0_6 = arith.constant 0 : index
    %c0_7 = arith.constant 0 : index
    %5 = vector.load %arg4[%c0_5, %c0_6, %c0_7] : memref<9x8x4xbf16, #tpu.memory_space<vmem>>, vector<1x8x4xbf16>
    %6 = vector.shape_cast %5 : vector<1x8x4xbf16> to vector<8x4xbf16>
    %cst = arith.constant dense<0.000000e+00> : vector<8x384xf32>
    %7 = tpu.matmul %6, %1, %cst {dimension_numbers = #tpu.dot_dimension_numbers<[1], [0], [0], [1], [0, 0, 1, 1], [], []>} : vector<8x4xbf16>, vector<4x384xbf16>, vector<8x384xf32> -> vector<8x384xf32>
    %8 = vector.extract_strided_slice %4 {offsets = [0, 1], sizes = [4, 384], strides = [1, 1]} : vector<4x768xbf16> to vector<4x384xbf16>
    %c1 = arith.constant 1 : index
    %c0_8 = arith.constant 0 : index
    %c0_9 = arith.constant 0 : index
    %9 = vector.load %arg4[%c1, %c0_8, %c0_9] : memref<9x8x4xbf16, #tpu.memory_space<vmem>>, vector<1x8x4xbf16>
    %10 = vector.shape_cast %9 : vector<1x8x4xbf16> to vector<8x4xbf16>
    %cst_10 = arith.constant dense<0.000000e+00> : vector<8x384xf32>
    %11 = tpu.matmul %10, %8, %cst_10 {dimension_numbers = #tpu.dot_dimension_numbers<[1], [0], [0], [1], [0, 0, 1, 1], [], []>} : vector<8x4xbf16>, vector<4x384xbf16>, vector<8x384xf32> -> vector<8x384xf32>
    %12 = arith.addf %7, %11 : vector<8x384xf32>
    %13 = vector.extract_strided_slice %4 {offsets = [0, 2], sizes = [4, 384], strides = [1, 1]} : vector<4x768xbf16> to vector<4x384xbf16>
    %c2 = arith.constant 2 : index
    %c0_11 = arith.constant 0 : index
    %c0_12 = arith.constant 0 : index
    %14 = vector.load %arg4[%c2, %c0_11, %c0_12] : memref<9x8x4xbf16, #tpu.memory_space<vmem>>, vector<1x8x4xbf16>
    %15 = vector.shape_cast %14 : vector<1x8x4xbf16> to vector<8x4xbf16>
    %cst_13 = arith.constant dense<0.000000e+00> : vector<8x384xf32>
    %16 = tpu.matmul %15, %13, %cst_13 {dimension_numbers = #tpu.dot_dimension_numbers<[1], [0], [0], [1], [0, 0, 1, 1], [], []>} : vector<8x4xbf16>, vector<4x384xbf16>, vector<8x384xf32> -> vector<8x384xf32>
    %17 = arith.addf %12, %16 : vector<8x384xf32>
    %18 = vector.extract_strided_slice %4 {offsets = [0, 18], sizes = [4, 384], strides = [1, 1]} : vector<4x768xbf16> to vector<4x384xbf16>
    %c3 = arith.constant 3 : index
    %c0_14 = arith.constant 0 : index
    %c0_15 = arith.constant 0 : index
    %19 = vector.load %arg4[%c3, %c0_14, %c0_15] : memref<9x8x4xbf16, #tpu.memory_space<vmem>>, vector<1x8x4xbf16>
    %20 = vector.shape_cast %19 : vector<1x8x4xbf16> to vector<8x4xbf16>
    %cst_16 = arith.constant dense<0.000000e+00> : vector<8x384xf32>
    %21 = tpu.matmul %20, %18, %cst_16 {dimension_numbers = #tpu.dot_dimension_numbers<[1], [0], [0], [1], [0, 0, 1, 1], [], []>} : vector<8x4xbf16>, vector<4x384xbf16>, vector<8x384xf32> -> vector<8x384xf32>
    %22 = arith.addf %17, %21 : vector<8x384xf32>
    %23 = vector.extract_strided_slice %4 {offsets = [0, 19], sizes = [4, 384], strides = [1, 1]} : vector<4x768xbf16> to vector<4x384xbf16>
    %c4 = arith.constant 4 : index
    %c0_17 = arith.constant 0 : index
    %c0_18 = arith.constant 0 : index
    %24 = vector.load %arg4[%c4, %c0_17, %c0_18] : memref<9x8x4xbf16, #tpu.memory_space<vmem>>, vector<1x8x4xbf16>
    %25 = vector.shape_cast %24 : vector<1x8x4xbf16> to vector<8x4xbf16>
    %cst_19 = arith.constant dense<0.000000e+00> : vector<8x384xf32>
    %26 = tpu.matmul %25, %23, %cst_19 {dimension_numbers = #tpu.dot_dimension_numbers<[1], [0], [0], [1], [0, 0, 1, 1], [], []>} : vector<8x4xbf16>, vector<4x384xbf16>, vector<8x384xf32> -> vector<8x384xf32>
    %27 = arith.addf %22, %26 : vector<8x384xf32>
    %28 = vector.extract_strided_slice %4 {offsets = [0, 20], sizes = [4, 384], strides = [1, 1]} : vector<4x768xbf16> to vector<4x384xbf16>
    %c5 = arith.constant 5 : index
    %c0_20 = arith.constant 0 : index
    %c0_21 = arith.constant 0 : index
    %29 = vector.load %arg4[%c5, %c0_20, %c0_21] : memref<9x8x4xbf16, #tpu.memory_space<vmem>>, vector<1x8x4xbf16>
    %30 = vector.shape_cast %29 : vector<1x8x4xbf16> to vector<8x4xbf16>
    %cst_22 = arith.constant dense<0.000000e+00> : vector<8x384xf32>
    %31 = tpu.matmul %30, %28, %cst_22 {dimension_numbers = #tpu.dot_dimension_numbers<[1], [0], [0], [1], [0, 0, 1, 1], [], []>} : vector<8x4xbf16>, vector<4x384xbf16>, vector<8x384xf32> -> vector<8x384xf32>
    %32 = arith.addf %27, %31 : vector<8x384xf32>
    %33 = vector.extract_strided_slice %4 {offsets = [0, 36], sizes = [4, 384], strides = [1, 1]} : vector<4x768xbf16> to vector<4x384xbf16>
    %c6 = arith.constant 6 : index
    %c0_23 = arith.constant 0 : index
    %c0_24 = arith.constant 0 : index
    %34 = vector.load %arg4[%c6, %c0_23, %c0_24] : memref<9x8x4xbf16, #tpu.memory_space<vmem>>, vector<1x8x4xbf16>
    %35 = vector.shape_cast %34 : vector<1x8x4xbf16> to vector<8x4xbf16>
    %cst_25 = arith.constant dense<0.000000e+00> : vector<8x384xf32>
    %36 = tpu.matmul %35, %33, %cst_25 {dimension_numbers = #tpu.dot_dimension_numbers<[1], [0], [0], [1], [0, 0, 1, 1], [], []>} : vector<8x4xbf16>, vector<4x384xbf16>, vector<8x384xf32> -> vector<8x384xf32>
    %37 = arith.addf %32, %36 : vector<8x384xf32>
    %38 = vector.extract_strided_slice %4 {offsets = [0, 37], sizes = [4, 384], strides = [1, 1]} : vector<4x768xbf16> to vector<4x384xbf16>
    %c7 = arith.constant 7 : index
    %c0_26 = arith.constant 0 : index
    %c0_27 = arith.constant 0 : index
    %39 = vector.load %arg4[%c7, %c0_26, %c0_27] : memref<9x8x4xbf16, #tpu.memory_space<vmem>>, vector<1x8x4xbf16>
    %40 = vector.shape_cast %39 : vector<1x8x4xbf16> to vector<8x4xbf16>
    %cst_28 = arith.constant dense<0.000000e+00> : vector<8x384xf32>
    %41 = tpu.matmul %40, %38, %cst_28 {dimension_numbers = #tpu.dot_dimension_numbers<[1], [0], [0], [1], [0, 0, 1, 1], [], []>} : vector<8x4xbf16>, vector<4x384xbf16>, vector<8x384xf32> -> vector<8x384xf32>
    %42 = arith.addf %37, %41 : vector<8x384xf32>
    %43 = vector.extract_strided_slice %4 {offsets = [0, 38], sizes = [4, 384], strides = [1, 1]} : vector<4x768xbf16> to vector<4x384xbf16>
    %c8 = arith.constant 8 : index
    %c0_29 = arith.constant 0 : index
    %c0_30 = arith.constant 0 : index
    %44 = vector.load %arg4[%c8, %c0_29, %c0_30] : memref<9x8x4xbf16, #tpu.memory_space<vmem>>, vector<1x8x4xbf16>
    %45 = vector.shape_cast %44 : vector<1x8x4xbf16> to vector<8x4xbf16>
    %cst_31 = arith.constant dense<0.000000e+00> : vector<8x384xf32>
    %46 = tpu.matmul %45, %43, %cst_31 {dimension_numbers = #tpu.dot_dimension_numbers<[1], [0], [0], [1], [0, 0, 1, 1], [], []>} : vector<8x4xbf16>, vector<4x384xbf16>, vector<8x384xf32> -> vector<8x384xf32>
    %47 = arith.addf %42, %46 : vector<8x384xf32>
    %c0_32 = arith.constant 0 : index
    %c0_33 = arith.constant 0 : index
    %48 = vector.load %arg5[%c0_32, %c0_33] : memref<8x1xf32, #tpu.memory_space<vmem>>, vector<8x1xf32>
    %49 = vector.broadcast %48 : vector<8x1xf32> to vector<8x384xf32>
    %50 = arith.addf %47, %49 : vector<8x384xf32>
    %cst_34 = arith.constant 0.000000e+00 : f32
    %51 = vector.broadcast %cst_34 : f32 to vector<8x384xf32>
    %52 = arith.maximumf %50, %51 : vector<8x384xf32>
    %c0_35 = arith.constant 0 : index
    %c0_36 = arith.constant 0 : index
    %c0_37 = arith.constant 0 : index
    %53 = vector.load %arg6[%c0_35, %c0_36, %c0_37] : memref<1x8x384xf32, #tpu.memory_space<vmem>>, vector<1x8x384xf32>
    %54 = vector.shape_cast %53 : vector<1x8x384xf32> to vector<8x384xf32>
    %55 = vector.shape_cast %52 : vector<8x384xf32> to vector<1x8x384xf32>
    tpu.vector_store %arg6[%c0_35, %c0_36, %c0_37], %55 {strides = array<i32>} : memref<1x8x384xf32, #tpu.memory_space<vmem>>, vector<1x8x384xf32>,
    return
  }
  func.func @transform_0(%arg0: i32, %arg1: i32) -> (i32, i32, i32) {
    %c0_i32 = arith.constant 0 : i32
    %c0_i32_0 = arith.constant 0 : i32
    return %arg0, %c0_i32, %arg1 : i32, i32, i32
  }
  func.func @transform_1(%arg0: i32, %arg1: i32) -> (i32, i32, i32) {
    %c1_i32 = arith.constant 1 : i32
    %0 = arith.addi %arg1, %c1_i32 : i32
    %c0_i32 = arith.constant 0 : i32
    %c0_i32_0 = arith.constant 0 : i32
    return %arg0, %c0_i32, %0 : i32, i32, i32
  }
  func.func @transform_2(%arg0: i32, %arg1: i32) -> (i32, i32, i32) {
    %c0_i32 = arith.constant 0 : i32
    %c0_i32_0 = arith.constant 0 : i32
    %c0_i32_1 = arith.constant 0 : i32
    %c0_i32_2 = arith.constant 0 : i32
    return %c0_i32, %c0_i32_0, %c0_i32_1 : i32, i32, i32
  }
  func.func @transform_3(%arg0: i32, %arg1: i32) -> (i32, i32) {
    %c0_i32 = arith.constant 0 : i32
    %c0_i32_0 = arith.constant 0 : i32
    %c0_i32_1 = arith.constant 0 : i32
    return %c0_i32, %c0_i32_0 : i32, i32
  }
  func.func @transform_4(%arg0: i32, %arg1: i32) -> (i32, i32, i32) {
    %c0_i32 = arith.constant 0 : i32
    %c0_i32_0 = arith.constant 0 : i32
    return %arg0, %c0_i32, %arg1 : i32, i32, i32
  }
}

module attributes {stable_mosaic.version = 11 : i64} {
  func.func @_conv_bn_relu_kernel(%arg0: i32, %arg1: i32, %arg2: memref<1x4x384xbf16, #tpu.memory_space<vmem>>, %arg3: memref<1x4x384xbf16, #tpu.memory_space<vmem>>, %arg4: memref<9x8x4xbf16, #tpu.memory_space<vmem>>, %arg5: memref<8x1xf32, #tpu.memory_space<vmem>>, %arg6: memref<1x8x384xf32, #tpu.memory_space<vmem>>) attributes {dimension_semantics = [#tpu.dimension_semantics<parallel>, #tpu.dimension_semantics<parallel>], iteration_bounds = array<i64: 2, 1>, scalar_prefetch = 0 : i64, scratch_operands = 0 : i64, tpu.core_type = #tpu.core_type<tc>, window_params = [{transform_indices = @transform_0, window_bounds = array<i64: 1, 4, 384>}, {transform_indices = @transform_1, window_bounds = array<i64: 1, 4, 384>}, {pipeline_mode = #tpu.pipeline_mode<synchronous>, transform_indices = @transform_2, window_bounds = array<i64: 9, 8, 4>}, {pipeline_mode = #tpu.pipeline_mode<synchronous>, transform_indices = @transform_3, window_bounds = array<i64: 8, 1>}, {transform_indices = @transform_4, window_bounds = array<i64: 1, 8, 384>}]} {
    %c0 = arith.constant 0 : index
    %c0_0 = arith.constant 0 : index
    %c0_1 = arith.constant 0 : index
    %0 = vector.load %arg2[%c0, %c0_0, %c0_1] : memref<1x4x384xbf16, #tpu.memory_space<vmem>>, vector<1x4x384xbf16>
    %1 = vector.shape_cast %0 : vector<1x4x384xbf16> to vector<4x384xbf16>
    %c0_2 = arith.constant 0 : index
    %c0_3 = arith.constant 0 : index
    %c0_4 = arith.constant 0 : index
    %2 = vector.load %arg3[%c0_2, %c0_3, %c0_4] : memref<1x4x384xbf16, #tpu.memory_space<vmem>>, vector<1x4x384xbf16>
    %3 = vector.shape_cast %2 : vector<1x4x384xbf16> to vector<4x384xbf16>
    %4 = tpu.concatenate %1, %3 in 1 : vector<4x384xbf16>, vector<4x384xbf16> -> vector<4x768xbf16>
    %c0_5 = arith.constant 0 : index
    %c0_6 = arith.constant 0 : index
    %c0_7 = arith.constant 0 : index
    %5 = vector.load %arg4[%c0_5, %c0_6, %c0_7] : memref<9x8x4xbf16, #tpu.memory_space<vmem>>, vector<1x8x4xbf16>
    %6 = vector.shape_cast %5 : vector<1x8x4xbf16> to vector<8x4xbf16>
    %cst = arith.constant dense<0.000000e+00> : vector<8x384xf32>
    %7 = tpu.matmul %6, %1, %cst {dimension_numbers = #tpu.dot_dimension_numbers<[1], [0], [0], [1], [0, 0, 1, 1], [], []>} : vector<8x4xbf16>, vector<4x384xbf16>, vector<8x384xf32> -> vector<8x384xf32>
    %8 = vector.extract_strided_slice %4 {offsets = [0, 1], sizes = [4, 384], strides = [1, 1]} : vector<4x768xbf16> to vector<4x384xbf16>
    %c1 = arith.constant 1 : index
    %c0_8 = arith.constant 0 : index
    %c0_9 = arith.constant 0 : index
    %9 = vector.load %arg4[%c1, %c0_8, %c0_9] : memref<9x8x4xbf16, #tpu.memory_space<vmem>>, vector<1x8x4xbf16>
    %10 = vector.shape_cast %9 : vector<1x8x4xbf16> to vector<8x4xbf16>
    %cst_10 = arith.constant dense<0.000000e+00> : vector<8x384xf32>
    %11 = tpu.matmul %10, %8, %cst_10 {dimension_numbers = #tpu.dot_dimension_numbers<[1], [0], [0], [1], [0, 0, 1, 1], [], []>} : vector<8x4xbf16>, vector<4x384xbf16>, vector<8x384xf32> -> vector<8x384xf32>
    %12 = arith.addf %7, %11 : vector<8x384xf32>
    %13 = vector.extract_strided_slice %4 {offsets = [0, 2], sizes = [4, 384], strides = [1, 1]} : vector<4x768xbf16> to vector<4x384xbf16>
    %c2 = arith.constant 2 : index
    %c0_11 = arith.constant 0 : index
    %c0_12 = arith.constant 0 : index
    %14 = vector.load %arg4[%c2, %c0_11, %c0_12] : memref<9x8x4xbf16, #tpu.memory_space<vmem>>, vector<1x8x4xbf16>
    %15 = vector.shape_cast %14 : vector<1x8x4xbf16> to vector<8x4xbf16>
    %cst_13 = arith.constant dense<0.000000e+00> : vector<8x384xf32>
    %16 = tpu.matmul %15, %13, %cst_13 {dimension_numbers = #tpu.dot_dimension_numbers<[1], [0], [0], [1], [0, 0, 1, 1], [], []>} : vector<8x4xbf16>, vector<4x384xbf16>, vector<8x384xf32> -> vector<8x384xf32>
    %17 = arith.addf %12, %16 : vector<8x384xf32>
    %18 = vector.extract_strided_slice %4 {offsets = [0, 18], sizes = [4, 384], strides = [1, 1]} : vector<4x768xbf16> to vector<4x384xbf16>
    %c3 = arith.constant 3 : index
    %c0_14 = arith.constant 0 : index
    %c0_15 = arith.constant 0 : index
    %19 = vector.load %arg4[%c3, %c0_14, %c0_15] : memref<9x8x4xbf16, #tpu.memory_space<vmem>>, vector<1x8x4xbf16>
    %20 = vector.shape_cast %19 : vector<1x8x4xbf16> to vector<8x4xbf16>
    %cst_16 = arith.constant dense<0.000000e+00> : vector<8x384xf32>
    %21 = tpu.matmul %20, %18, %cst_16 {dimension_numbers = #tpu.dot_dimension_numbers<[1], [0], [0], [1], [0, 0, 1, 1], [], []>} : vector<8x4xbf16>, vector<4x384xbf16>, vector<8x384xf32> -> vector<8x384xf32>
    %22 = arith.addf %17, %21 : vector<8x384xf32>
    %23 = vector.extract_strided_slice %4 {offsets = [0, 19], sizes = [4, 384], strides = [1, 1]} : vector<4x768xbf16> to vector<4x384xbf16>
    %c4 = arith.constant 4 : index
    %c0_17 = arith.constant 0 : index
    %c0_18 = arith.constant 0 : index
    %24 = vector.load %arg4[%c4, %c0_17, %c0_18] : memref<9x8x4xbf16, #tpu.memory_space<vmem>>, vector<1x8x4xbf16>
    %25 = vector.shape_cast %24 : vector<1x8x4xbf16> to vector<8x4xbf16>
    %cst_19 = arith.constant dense<0.000000e+00> : vector<8x384xf32>
    %26 = tpu.matmul %25, %23, %cst_19 {dimension_numbers = #tpu.dot_dimension_numbers<[1], [0], [0], [1], [0, 0, 1, 1], [], []>} : vector<8x4xbf16>, vector<4x384xbf16>, vector<8x384xf32> -> vector<8x384xf32>
    %27 = arith.addf %22, %26 : vector<8x384xf32>
    %28 = vector.extract_strided_slice %4 {offsets = [0, 20], sizes = [4, 384], strides = [1, 1]} : vector<4x768xbf16> to vector<4x384xbf16>
    %c5 = arith.constant 5 : index
    %c0_20 = arith.constant 0 : index
    %c0_21 = arith.constant 0 : index
    %29 = vector.load %arg4[%c5, %c0_20, %c0_21] : memref<9x8x4xbf16, #tpu.memory_space<vmem>>, vector<1x8x4xbf16>
    %30 = vector.shape_cast %29 : vector<1x8x4xbf16> to vector<8x4xbf16>
    %cst_22 = arith.constant dense<0.000000e+00> : vector<8x384xf32>
    %31 = tpu.matmul %30, %28, %cst_22 {dimension_numbers = #tpu.dot_dimension_numbers<[1], [0], [0], [1], [0, 0, 1, 1], [], []>} : vector<8x4xbf16>, vector<4x384xbf16>, vector<8x384xf32> -> vector<8x384xf32>
    %32 = arith.addf %27, %31 : vector<8x384xf32>
    %33 = vector.extract_strided_slice %4 {offsets = [0, 36], sizes = [4, 384], strides = [1, 1]} : vector<4x768xbf16> to vector<4x384xbf16>
    %c6 = arith.constant 6 : index
    %c0_23 = arith.constant 0 : index
    %c0_24 = arith.constant 0 : index
    %34 = vector.load %arg4[%c6, %c0_23, %c0_24] : memref<9x8x4xbf16, #tpu.memory_space<vmem>>, vector<1x8x4xbf16>
    %35 = vector.shape_cast %34 : vector<1x8x4xbf16> to vector<8x4xbf16>
    %cst_25 = arith.constant dense<0.000000e+00> : vector<8x384xf32>
    %36 = tpu.matmul %35, %33, %cst_25 {dimension_numbers = #tpu.dot_dimension_numbers<[1], [0], [0], [1], [0, 0, 1, 1], [], []>} : vector<8x4xbf16>, vector<4x384xbf16>, vector<8x384xf32> -> vector<8x384xf32>
    %37 = arith.addf %32, %36 : vector<8x384xf32>
    %38 = vector.extract_strided_slice %4 {offsets = [0, 37], sizes = [4, 384], strides = [1, 1]} : vector<4x768xbf16> to vector<4x384xbf16>
    %c7 = arith.constant 7 : index
    %c0_26 = arith.constant 0 : index
    %c0_27 = arith.constant 0 : index
    %39 = vector.load %arg4[%c7, %c0_26, %c0_27] : memref<9x8x4xbf16, #tpu.memory_space<vmem>>, vector<1x8x4xbf16>
    %40 = vector.shape_cast %39 : vector<1x8x4xbf16> to vector<8x4xbf16>
    %cst_28 = arith.constant dense<0.000000e+00> : vector<8x384xf32>
    %41 = tpu.matmul %40, %38, %cst_28 {dimension_numbers = #tpu.dot_dimension_numbers<[1], [0], [0], [1], [0, 0, 1, 1], [], []>} : vector<8x4xbf16>, vector<4x384xbf16>, vector<8x384xf32> -> vector<8x384xf32>
    %42 = arith.addf %37, %41 : vector<8x384xf32>
    %43 = vector.extract_strided_slice %4 {offsets = [0, 38], sizes = [4, 384], strides = [1, 1]} : vector<4x768xbf16> to vector<4x384xbf16>
    %c8 = arith.constant 8 : index
    %c0_29 = arith.constant 0 : index
    %c0_30 = arith.constant 0 : index
    %44 = vector.load %arg4[%c8, %c0_29, %c0_30] : memref<9x8x4xbf16, #tpu.memory_space<vmem>>, vector<1x8x4xbf16>
    %45 = vector.shape_cast %44 : vector<1x8x4xbf16> to vector<8x4xbf16>
    %cst_31 = arith.constant dense<0.000000e+00> : vector<8x384xf32>
    %46 = tpu.matmul %45, %43, %cst_31 {dimension_numbers = #tpu.dot_dimension_numbers<[1], [0], [0], [1], [0, 0, 1, 1], [], []>} : vector<8x4xbf16>, vector<4x384xbf16>, vector<8x384xf32> -> vector<8x384xf32>
    %47 = arith.addf %42, %46 : vector<8x384xf32>
    %c0_32 = arith.constant 0 : index
    %c0_33 = arith.constant 0 : index
    %48 = vector.load %arg5[%c0_32, %c0_33] : memref<8x1xf32, #tpu.memory_space<vmem>>, vector<8x1xf32>
    %49 = vector.broadcast %48 : vector<8x1xf32> to vector<8x384xf32>
    %50 = arith.addf %47, %49 : vector<8x384xf32>
    %cst_34 = arith.constant 0.000000e+00 : f32
    %51 = vector.broadcast %cst_34 : f32 to vector<8x384xf32>
    %52 = arith.maximumf %50, %51 : vector<8x384xf32>
    %c0_35 = arith.constant 0 : index
    %c0_36 = arith.constant 0 : index
    %c0_37 = arith.constant 0 : index
    %53 = vector.load %arg6[%c0_35, %c0_36, %c0_37] : memref<1x8x384xf32, #tpu.memory_space<vmem>>, vector<1x8x384xf32>
    %54 = vector.shape_cast %53 : vector<1x8x384xf32> to vector<8x384xf32>
    %55 = vector.shape_cast %52 : vector<8x384xf32> to vector<1x8x384xf32>
    tpu.vector_store %arg6[%c0_35, %c0_36, %c0_37], %55 {strides = array<i32>} : memref<1x8x384xf32, #tpu.memory_space<vmem>>, vector<1x8x384xf32>,
    return
  }
  func.func @transform_0(%arg0: i32, %arg1: i32) -> (i32, i32, i32) {
    %c0_i32 = arith.constant 0 : i32
    %c0_i32_0 = arith.constant 0 : i32
    return %arg0, %c0_i32, %arg1 : i32, i32, i32
  }
  func.func @transform_1(%arg0: i32, %arg1: i32) -> (i32, i32, i32) {
    %c1_i32 = arith.constant 1 : i32
    %0 = arith.addi %arg1, %c1_i32 : i32
    %c0_i32 = arith.constant 0 : i32
    %c0_i32_0 = arith.constant 0 : i32
    return %arg0, %c0_i32, %0 : i32, i32, i32
  }
  func.func @transform_2(%arg0: i32, %arg1: i32) -> (i32, i32, i32) {
    %c0_i32 = arith.constant 0 : i32
    %c0_i32_0 = arith.constant 0 : i32
    %c0_i32_1 = arith.constant 0 : i32
    %c0_i32_2 = arith.constant 0 : i32
    return %c0_i32, %c0_i32_0, %c0_i32_1 : i32, i32, i32
  }
  func.func @transform_3(%arg0: i32, %arg1: i32) -> (i32, i32) {
    %c0_i32 = arith.constant 0 : i32
    %c0_i32_0 = arith.constant 0 : i32
    %c0_i32_1 = arith.constant 0 : i32
    return %c0_i32, %c0_i32_0 : i32, i32
  }
  func.func @transform_4(%arg0: i32, %arg1: i32) -> (i32, i32, i32) {
    %c0_i32 = arith.constant 0 : i32
    %c0_i32_0 = arith.constant 0 : i32
    return %arg0, %c0_i32, %arg1 : i32, i32, i32
  }
}

</mosaic_0001>

<bundles_post_ra>
// kernel: tpu_custom_call.1
= control target key start
LH: loop header
LB: loop body
LE: loop exit
PB: predicated region body
PF: predicated region fallthrough
CT: control target
= control target key end

     0   :  { %9 = vsyncpa [#allocation3], 0  ;;  %s1964_s0 = inlined_call_operand.vmem [shape: bf16[2,4,768], index: 0, kind: input, shape index: {}]   ;;  %s1965_s1 = inlined_call_operand.vmem [shape: bf16[2,4,768], index: 1, kind: input, shape index: {}]   ;;  %s1966_s2 = inlined_call_operand.vmem [shape: bf16[9,8,4], index: 2, kind: input, shape index: {}]   ;;  %s1967_s3 = inlined_call_operand.vmem [shape: f32[8,1], index: 3, kind: input, shape index: {}]   ;;  %s1968_s4 = inlined_call_operand.hbm [shape: f32[2,8,384], index: 4, kind: output, shape index: {}]  }
   0x1   :  { %11 = vsyncpa [#allocation3 + $0x1], 0  ;;  %s1709_s15 = smov 0   ;;  %s1711_s16 = smov 0  }
   0x2   :  { %s1713_s17 = smov 0   ;;  %s1715_s18 = smov 0  }
   0x3   :  { %s1717_s19 = smov 0   ;;  %s1719_s20 = smov 0  }
   0x4 LB: > { %s1397_s21 = sadd.s32 4294967295, %s1669_s20   ;;  %s1398_s22 = sadd.s32 4294967294, %s1669_s20   ;;  %s1669_s20 = sphi %s1719_s20, %s17_s20   ;;  %s1665_s19 = sphi %s1717_s19, %s1975_s19   ;;  %s1661_s18 = sphi %s1715_s18, %s1974_s18   ;;  %s1657_s17 = sphi %s1713_s17, %s1973_s17   ;;  %s1653_s16 = sphi %s1711_s16, %s1972_s16   ;;  %s1649_s15 = sphi %s1709_s15, %s1971_s15  }
   0x5   : > { %s29_s23 = sadd.s32 1, %s1665_s19  ;;  %s138_s24 = sadd.s32 1, %s1657_s17 }
   0x6   : > { %p31_p0 = scmp.ge.s32.totalorder %s29_s23, 2  ;;  %p148_p1 = scmp.ne.s32.totalorder %s1657_s17, %s1653_s16 }
   0x7   : > { %p149_p2 = scmp.eq.s32.totalorder %s1397_s21, 1  ;;  %p154_p3 = scmp.ne.s32.totalorder %s1653_s16, %s1649_s15 }
   0x8   : > { %s1977_s23 = smov (%p31_p0, %s29_s23), 0  ;;  %p155_p5 = scmp.eq.s32.totalorder %s1398_s22, 1 }
   0x9   : > { %p1749_p4 = por %p149_p2, %p148_p1  ;;  %s133_s26 = ssub.s32 %s1665_s19, %s1977_s23 }
   0xa   : > { %p1401_p6 = scmp.ge.s32.totalorder %s1669_s20, 1  ;;  %p136_p7 = scmp.eq.s32.totalorder %s133_s26, 0 }
   0xb   : > { %p1756_p8 = por %p155_p5, %p154_p3  ;;  %p207_p9 = scmp.lt.s32.totalorder %s1669_s20, 3 }
   0xc   : > { %s1762_s28 = scalar_select %p136_p7, %s1657_s17, %s138_s24  }
   0xd   : > { %p208_p10 = pnand %p1401_p6, %p207_p9 }
   0xe   : > { %p248_p11 = scmp.lt.s32.totalorder (!%p208_p10), %s1661_s18, 1  ;;  %v278_v0 = vlaneseq (!%p208_p10)  ;;  %v1671_v1 = vmov (!%p208_p10), 1983009808   ;;  %v1672_v5 = vmov (!%p208_p10), 0.0   ;;  %v1673_v6 = vmov (!%p208_p10), 0   ;;  %s1675_s9 = smov (!%p208_p10), 127  }
   0xf   : > { %211 = sbr.rel (%p208_p10) target bundleno = 452 (0x1c4), region = 36  ;;  %v276_v2 = vunpack.c.l.s4 (!%p208_p10), %v1671_v1  ;;  %1463 = vmatprep.subr.bf16.mxu1 (!%p208_p10), %v1672_v5  ;;  %359 = vmatprep.mubr.bf16.mxu0 (!%p208_p10), %v1673_v6  ;;  %vm1674_vm0 = vmmov (!%p208_p10), 0   ;;  %s1676_s13 = smov (!%p208_p10), 126   ;;  %v1271_v14 = vld [vmem:[%s1967_s3] sm:$0xff] (!%p208_p10)  ;;  %vm309_vm1 = vcmask (!%p208_p10), 1039360   ;;  %vm317_vm2 = vcmask (!%p208_p10), 1041408  }
  0x10   : > { %v279_v3 = vshrl.u32 (!%p208_p10), %v278_v0, 7  ;;  %1589 = vset.pattern.permute.xlu0 (!%p208_p10), %v1673_v6  ;;  %1465 = vmatprep.mubr.msk.bf16.mxu1 (!%p208_p10), %vm1674_vm0, %v1672_v5  ;;  %s1677_s14 = smov (!%p208_p10), 110   ;;  %s1678_s21 = smov (!%p208_p10), 109   ;;  %v1405_v23 = vld [vmem:[%s1966_s2 + $0x4] sm:$0xf] (!%p208_p10)  ;;  %vm313_vm3 = vcmask (!%p208_p10), 31744  }
  0x11   : > { %v277_v4 = vunpack.c.0.s8 (!%p208_p10), %v276_v2  ;;  %s1679_s22 = smov (!%p208_p10), 108   ;;  %s1680_s24 = smov (!%p208_p10), 92   ;;  %vm511_vm4 = vcmask (!%p208_p10), 1031168   ;;  %v298_v34 = vld [vmem:[%s1966_s2] sm:$0xf] (!%p208_p10)  ;;  %vm621_vm5 = vcmask (!%p208_p10), 900096  }
  0x12   : > { %s1681_s26 = smov (!%p208_p10), 91   ;;  %v1412_v44 = vld [vmem:[%s1966_s2 + $0x8] sm:$0xf] (!%p208_p10)  ;;  %vm731_vm6 = vcmask (!%p208_p10), 891904   ;;  %v1416_v54 = vld [vmem:[%s1966_s2 + $0xc] sm:$0xf] (!%p208_p10) }
  0x13   : > { %v280_v7 = vsub.s32 (!%p208_p10), %v277_v4, %v279_v3  ;;  %vm841_vm7 = vcmask (!%p208_p10), 883712   ;;  %v1420_v0 = vld [vmem:[%s1966_s2 + $0x10] sm:$0xf] (!%p208_p10)  ;;  %vm951_vm8 = vcmask (!%p208_p10), 752640   ;;  %vm1061_vm9 = vcmask (!%p208_p10), 744448   ;;  %s1520_s10 = smul.u32 (!%p208_p10), 384, %s1661_s18 }
  0x14   : > { %vm1171_vm10 = vcmask (!%p208_p10), 736256  }
  0x16   : > { %s249_s29 = scalar_select %p248_p11, %s1661_s18, 1 }
  0x18   : > { %s1518_s30 = smul.u32 12, %s249_s29  ;;  %s1682_s29 = smov 90  }
  0x1a   : > { %s255_s7 = scalar_lea.vmem %s1964_s0, %s1518_s30  ;;  %s1444_s8 = sadd.s32 6, %s1518_s30 }
  0x1b   : > { %v271_v8 = vld [vmem:[%s255_s7] sm:$0x3f]  ;;  %s266_s12 = scalar_lea.vmem %s1965_s1, %s1444_s8  ;;  %s244_s8 = sand.u32 1, %s1653_s16  }
  0x1c   : > { %v1774_v9 = vrot.slane %v271_v8, %v280_v7  ;;  %v274_v10 = vcombine.high %v271_v8, %v271_v8  ;;  %v1404_v13 = vld.sshfl [vmem:[%s266_s12] sm:$0x3f pattern:$0x76325410]  ;;  %s1287_s18 = scalar_lea.sflag [#allocation3], %s244_s8 }
  0x1e   : > { %301 = vrot.lane.b32.xlu0 %v1774_v9, %s1675_s9  ;;  %v1777_v11 = vrot.slane %v274_v10, %v280_v7  ;;  %v289_v12 = vcombine.high %v1774_v9, %v1774_v9  ;;  %v412_v26 = vsel %vm317_vm2, %v1774_v9, 0 }
  0x20   : > { %305 = vrot.lane.b32.xlu1 %v1777_v11, %s1675_s9  ;;  %v418_v28 = vsel %vm317_vm2, %v1777_v11, 0 }
  0x22   : > { %303 = vrot.lane.b32.xlu0 %v289_v12, %s1675_s9 }
  0x24   : > { %307 = vrot.lane.b32.xlu1 %v1404_v13, %s1675_s9  ;;  %s1517_s9 = smul.u32 24, %s244_s8 }
  0x26   : > { %503 = vrot.lane.b32.xlu0 %v1774_v9, %s1676_s13  ;;  %s246_s11 = scalar_lea.vmem [#allocation2], %s1517_s9 }
  0x27   : > { %s1303_s12 = sshll.u32 %s246_s11, 4  ;;  %s1917_s12 = int_to_ptr.vmem [resolvable:$true] %s1303_s12 }
  0x28   : > { %505 = vrot.lane.b32.xlu1 %v289_v12, %s1676_s13 }
  0x2a   : > { %507 = vrot.lane.b32.xlu0 %v1777_v11, %s1676_s13 }
  0x2c   : > { %509 = vrot.lane.b32.xlu1 %v1404_v13, %s1676_s13 }
  0x2e   : > { %613 = vrot.lane.b32.xlu0 %v1774_v9, %s1677_s14 }
  0x30   : > { %615 = vrot.lane.b32.xlu1 %v289_v12, %s1677_s14 }
  0x32   : > { %617 = vrot.lane.b32.xlu0 %v1777_v11, %s1677_s14 }
  0x34   : > { %619 = vrot.lane.b32.xlu1 %v1404_v13, %s1677_s14 }
  0x36   : > { %723 = vrot.lane.b32.xlu0 %v1774_v9, %s1678_s21 }
  0x38   : > { %725 = vrot.lane.b32.xlu1 %v289_v12, %s1678_s21 }
  0x3a   : > { %727 = vrot.lane.b32.xlu0 %v1777_v11, %s1678_s21 }
  0x3c   : > { %729 = vrot.lane.b32.xlu1 %v1404_v13, %s1678_s21  ;;  %s1915_s21 = scalar_lea.hbm %s1968_s4, %s1520_s10 }
  0x3e   : > { %833 = vrot.lane.b32.xlu0 %v1774_v9, %s1679_s22 }
  0x40   : > { %835 = vrot.lane.b32.xlu1 %v289_v12, %s1679_s22 }
  0x42   : > { %837 = vrot.lane.b32.xlu0 %v1777_v11, %s1679_s22 }
  0x44   : > { %839 = vrot.lane.b32.xlu1 %v1404_v13, %s1679_s22  ;;  %s1591_s22 = scalar_lea.vmem %s1917_s12, 384 }
  0x45   : > { %p1592_p12 = scmp.ne.s32.totalorder %s1917_s12, %s1591_s22 }
  0x46   : > { %943 = vrot.lane.b32.xlu0 %v1774_v9, %s1680_s24 }
  0x47   : > { %p1593_p13 = pnand %p1592_p12, %p1749_p4 }
  0x48   : > { %945 = vrot.lane.b32.xlu1 %v289_v12, %s1680_s24 }
  0x49   : > { %p1594_p0 = pneg %p1593_p13 }
  0x4a   : > { %947 = vrot.lane.b32.xlu0 %v1777_v11, %s1680_s24 }
  0x4c   : > { %949 = vrot.lane.b32.xlu1 %v1404_v13, %s1680_s24  ;;  %s1683_s24 = smov [#allocation2]  }
  0x4e   : > { %1053 = vrot.lane.b32.xlu0 %v1774_v9, %s1681_s26 }
  0x50   : > { %1055 = vrot.lane.b32.xlu1 %v289_v12, %s1681_s26 }
  0x52   : > { %1057 = vrot.lane.b32.xlu0 %v1777_v11, %s1681_s26 }
  0x54   : > { %1059 = vrot.lane.b32.xlu1 %v1404_v13, %s1681_s26  ;;  %s1595_s26 = sshll.u32 %s1683_s24, 4  ;;  %s1596_s26 = int_to_ptr.vmem [resolvable:$false] %s1595_s26 }
  0x55   : > { %p1598_p1 = scmp.lt.s32.totalorder %s1917_s12, %s1596_s26 }
  0x56   : > { %1163 = vrot.lane.b32.xlu0 %v1774_v9, %s1682_s29 }
  0x58   : > { %1165 = vrot.lane.b32.xlu1 %v289_v12, %s1682_s29 }
  0x5a   : > { %1167 = vrot.lane.b32.xlu0 %v1777_v11, %s1682_s29 }
  0x5c   : > { %1169 = vrot.lane.b32.xlu1 %v1404_v13, %s1682_s29  ;;  %s1597_s29 = scalar_lea.vmem %s1596_s26, 768 }
  0x5d   : > { %p1599_p2 = scmp.lt.s32.totalorder %s1597_s29, %s1591_s22 }
  0x5e   : > { %1274 = vperm.xlu0 %1589, %v1271_v14  }
  0x5f   : > { %p1600_p3 = por %p1599_p2, %p1598_p1 }
  0x61   : > { %p1601_p5 = pnand %p1600_p3, %p1594_p0 }
  0x90   : > { %v302_v15 = vpop.permute.xlu0 %301 }
  0x92   : > { %v306_v16 = vpop.permute.xlu1 %305 }
  0x94   : > { %v304_v17 = vpop.permute.xlu0 %303 }
  0x95   : > { %v311_v18 = vsel %vm309_vm1, %v304_v17, %v306_v16  ;;  %v310_v19 = vsel %vm309_vm1, %v302_v15, %v304_v17 }
  0x96   : > { %1406 = vmatprep.subr.msk.bf16.mxu0 %vm317_vm2, %v311_v18  ;;  %v308_v20 = vpop.permute.xlu1 %307  ;;  %v319_v21 = vsel %vm317_vm2, %v310_v19, 0 }
  0x97   : > { %328 = vmatpush1.bf16.msra.mxu0 %v319_v21  ;;  %v312_v22 = vsel %vm309_vm1, %v306_v16, %v308_v20 }
  0x98   : > { %v325_v24 = vsel %vm317_vm2, %v312_v22, 0  ;;  %v504_v25 = vpop.permute.xlu0 %503  ;;  %1409 = vmatprep.subr.msk.bf16.mxu0 %vm317_vm2, %v289_v12  ;;  %v1424_v12 = vld [vmem:[%s1966_s2 + $0x14] sm:$0xf]  ;;  %v1428_v22 = vld [vmem:[%s1966_s2 + $0x18] sm:$0xf] }
  0x99   : > { %1464 = vmatpush3.bf16.msra.mxu1 %v325_v24 }
  0x9a   : > { %1407 = vmatmul.mubr.msk.bf16.vlgmr.msra.gmra.mrb[0].mxu0 %vm313_vm3, %v1405_v23  ;;  %1469 = vmatprep.subr.bf16.mxu1 %v1672_v5  ;;  %v506_v27 = vpop.permute.xlu1 %505 }
  0x9b   : > { %421 = vmatpush1.bf16.msra.mxu0 %v412_v26  ;;  %452 = vmatprep.mubr.bf16.mxu0 %v1673_v6  ;;  %v512_v30 = vsel %vm511_vm4, %v504_v25, %v506_v27 }
  0x9c   : > { %1466 = vmatmul.mubr.msk.bf16.vlgmr.msra.gmra.mrb[0].mxu1 %vm313_vm3, %v1405_v23  ;;  %v508_v29 = vpop.permute.xlu0 %507  ;;  %v519_v35 = vsel %vm317_vm2, %v512_v30, 0 }
  0x9d   : > { %1470 = vmatpush3.bf16.msra.mxu1 %v418_v28  ;;  %v513_v31 = vsel %vm511_vm4, %v506_v27, %v508_v29  ;;  %1471 = vmatprep.mubr.msk.bf16.mxu1 %vm1674_vm0, %v1672_v5 }
  0x9e   : > { %1413 = vmatprep.subr.msk.bf16.mxu0 %vm317_vm2, %v513_v31  ;;  %v510_v32 = vpop.permute.xlu1 %509  ;;  %1475 = vmatprep.subr.bf16.mxu1 %v1672_v5 }
  0x9f   : > { %v514_v33 = vsel %vm511_vm4, %v508_v29, %v510_v32  ;;  %v1432_v32 = vld [vmem:[%s1966_s2 + $0x1c] sm:$0xf] }
  0xa0   : > { %v614_v36 = vpop.permute.xlu0 %613  ;;  %v525_v37 = vsel %vm317_vm2, %v514_v33, 0 }
  0xa2   : > { %1410 = vmatmul.mubr.msk.bf16.vlgmr.msra.gmra.mrb[4].mxu0 %vm313_vm3, %v298_v34  ;;  %v616_v38 = vpop.permute.xlu1 %615 }
  0xa3   : > { %528 = vmatpush1.bf16.msra.mxu0 %v519_v35  ;;  %559 = vmatprep.mubr.bf16.mxu0 %v1673_v6  ;;  %v622_v40 = vsel %vm621_vm5, %v614_v36, %v616_v38  ;;  %v1436_v35 = vld [vmem:[%s1966_s2 + $0x20] sm:$0xf] }
  0xa4   : > { %1472 = vmatmul.mubr.msk.bf16.vlgmr.msra.gmra.mrb[4].mxu1 %vm313_vm3, %v298_v34  ;;  %v618_v39 = vpop.permute.xlu0 %617  ;;  %v629_v45 = vsel %vm317_vm2, %v622_v40, 0 }
  0xa5   : > { %1476 = vmatpush3.bf16.msra.mxu1 %v525_v37  ;;  %v623_v41 = vsel %vm621_vm5, %v616_v38, %v618_v39  ;;  %1477 = vmatprep.mubr.msk.bf16.mxu1 %vm1674_vm0, %v1672_v5 }
  0xa6   : > { %1417 = vmatprep.subr.msk.bf16.mxu0 %vm317_vm2, %v623_v41  ;;  %v620_v42 = vpop.permute.xlu1 %619  ;;  %1481 = vmatprep.subr.bf16.mxu1 %v1672_v5 }
  0xa7   : > { %v624_v43 = vsel %vm621_vm5, %v618_v39, %v620_v42 }
  0xa8   : > { %v724_v46 = vpop.permute.xlu0 %723  ;;  %v635_v47 = vsel %vm317_vm2, %v624_v43, 0 }
  0xaa   : > { %1414 = vmatmul.mubr.msk.bf16.vlgmr.msra.gmra.mrb[8].mxu0 %vm313_vm3, %v1412_v44  ;;  %v726_v48 = vpop.permute.xlu1 %725 }
  0xab   : > { %638 = vmatpush1.bf16.msra.mxu0 %v629_v45  ;;  %669 = vmatprep.mubr.bf16.mxu0 %v1673_v6  ;;  %v732_v50 = vsel %vm731_vm6, %v724_v46, %v726_v48 }
  0xac   : > { %1478 = vmatmul.mubr.msk.bf16.vlgmr.msra.gmra.mrb[8].mxu1 %vm313_vm3, %v1412_v44  ;;  %v728_v49 = vpop.permute.xlu0 %727  ;;  %v739_v55 = vsel %vm317_vm2, %v732_v50, 0 }
  0xad   : > { %1482 = vmatpush3.bf16.msra.mxu1 %v635_v47  ;;  %v733_v51 = vsel %vm731_vm6, %v726_v48, %v728_v49  ;;  %1483 = vmatprep.mubr.msk.bf16.mxu1 %vm1674_vm0, %v1672_v5 }
  0xae   : > { %1421 = vmatprep.subr.msk.bf16.mxu0 %vm317_vm2, %v733_v51  ;;  %v730_v52 = vpop.permute.xlu1 %729  ;;  %1487 = vmatprep.subr.bf16.mxu1 %v1672_v5 }
  0xaf   : > { %v734_v53 = vsel %vm731_vm6, %v728_v49, %v730_v52 }
  0xb0   : > { %v834_v56 = vpop.permute.xlu0 %833  ;;  %v745_v57 = vsel %vm317_vm2, %v734_v53, 0 }
  0xb2   : > { %1418 = vmatmul.mubr.msk.bf16.vlgmr.msra.gmra.mrb[12].mxu0 %vm313_vm3, %v1416_v54  ;;  %v836_v58 = vpop.permute.xlu1 %835 }
  0xb3   : > { %748 = vmatpush1.bf16.msra.mxu0 %v739_v55  ;;  %779 = vmatprep.mubr.bf16.mxu0 %v1673_v6  ;;  %v842_v60 = vsel %vm841_vm7, %v834_v56, %v836_v58 }
  0xb4   : > { %1484 = vmatmul.mubr.msk.bf16.vlgmr.msra.gmra.mrb[12].mxu1 %vm313_vm3, %v1416_v54  ;;  %v838_v59 = vpop.permute.xlu0 %837  ;;  %v849_v1 = vsel %vm317_vm2, %v842_v60, 0 }
  0xb5   : > { %1488 = vmatpush3.bf16.msra.mxu1 %v745_v57  ;;  %v843_v61 = vsel %vm841_vm7, %v836_v58, %v838_v59  ;;  %1489 = vmatprep.mubr.msk.bf16.mxu1 %vm1674_vm0, %v1672_v5 }
  0xb6   : > { %1425 = vmatprep.subr.msk.bf16.mxu0 %vm317_vm2, %v843_v61  ;;  %v840_v62 = vpop.permute.xlu1 %839  ;;  %1493 = vmatprep.subr.bf16.mxu1 %v1672_v5 }
  0xb7   : > { %v844_v63 = vsel %vm841_vm7, %v838_v59, %v840_v62 }
  0xb8   : > { %v944_v2 = vpop.permute.xlu0 %943  ;;  %v855_v3 = vsel %vm317_vm2, %v844_v63, 0 }
  0xba   : > { %1422 = vmatmul.mubr.msk.bf16.vlgmr.msra.gmra.mrb[16].mxu0 %vm313_vm3, %v1420_v0  ;;  %v946_v4 = vpop.permute.xlu1 %945 }
  0xbb   : > { %858 = vmatpush1.bf16.msra.mxu0 %v849_v1  ;;  %889 = vmatprep.mubr.bf16.mxu0 %v1673_v6  ;;  %v952_v8 = vsel %vm951_vm8, %v944_v2, %v946_v4 }
  0xbc   : > { %1490 = vmatmul.mubr.msk.bf16.vlgmr.msra.gmra.mrb[16].mxu1 %vm313_vm3, %v1420_v0  ;;  %v948_v7 = vpop.permute.xlu0 %947  ;;  %v959_v13 = vsel %vm317_vm2, %v952_v8, 0 }
  0xbd   : > { %1494 = vmatpush3.bf16.msra.mxu1 %v855_v3  ;;  %v953_v9 = vsel %vm951_vm8, %v946_v4, %v948_v7  ;;  %1495 = vmatprep.mubr.msk.bf16.mxu1 %vm1674_vm0, %v1672_v5 }
  0xbe   : > { %1429 = vmatprep.subr.msk.bf16.mxu0 %vm317_vm2, %v953_v9  ;;  %v950_v10 = vpop.permute.xlu1 %949  ;;  %1499 = vmatprep.subr.bf16.mxu1 %v1672_v5 }
  0xbf   : > { %v954_v11 = vsel %vm951_vm8, %v948_v7, %v950_v10 }
  0xc0   : > { %v1054_v14 = vpop.permute.xlu0 %1053  ;;  %v965_v15 = vsel %vm317_vm2, %v954_v11, 0 }
  0xc2   : > { %1426 = vmatmul.mubr.msk.bf16.vlgmr.msra.gmra.mrb[20].mxu0 %vm313_vm3, %v1424_v12  ;;  %v1056_v16 = vpop.permute.xlu1 %1055 }
  0xc3   : > { %968 = vmatpush1.bf16.msra.mxu0 %v959_v13  ;;  %999 = vmatprep.mubr.bf16.mxu0 %v1673_v6  ;;  %v1062_v18 = vsel %vm1061_vm9, %v1054_v14, %v1056_v16 }
  0xc4   : > { %1496 = vmatmul.mubr.msk.bf16.vlgmr.msra.gmra.mrb[20].mxu1 %vm313_vm3, %v1424_v12  ;;  %v1058_v17 = vpop.permute.xlu0 %1057  ;;  %v1069_v23 = vsel %vm317_vm2, %v1062_v18, 0 }
  0xc5   : > { %1500 = vmatpush3.bf16.msra.mxu1 %v965_v15  ;;  %v1063_v19 = vsel %vm1061_vm9, %v1056_v16, %v1058_v17  ;;  %1501 = vmatprep.mubr.msk.bf16.mxu1 %vm1674_vm0, %v1672_v5 }
  0xc6   : > { %1433 = vmatprep.subr.msk.bf16.mxu0 %vm317_vm2, %v1063_v19  ;;  %v1060_v20 = vpop.permute.xlu1 %1059  ;;  %1505 = vmatprep.subr.bf16.mxu1 %v1672_v5 }
  0xc7   : > { %v1064_v21 = vsel %vm1061_vm9, %v1058_v17, %v1060_v20 }
  0xc8   : > { %v1164_v24 = vpop.permute.xlu0 %1163  ;;  %v1075_v25 = vsel %vm317_vm2, %v1064_v21, 0 }
  0xca   : > { %1430 = vmatmul.mubr.msk.bf16.vlgmr.msra.gmra.mrb[24].mxu0 %vm313_vm3, %v1428_v22  ;;  %v1166_v26 = vpop.permute.xlu1 %1165 }
  0xcb   : > { %1078 = vmatpush1.bf16.msra.mxu0 %v1069_v23  ;;  %1109 = vmatprep.mubr.bf16.mxu0 %v1673_v6  ;;  %v1172_v28 = vsel %vm1171_vm10, %v1164_v24, %v1166_v26 }
  0xcc   : > { %1502 = vmatmul.mubr.msk.bf16.vlgmr.msra.gmra.mrb[24].mxu1 %vm313_vm3, %v1428_v22  ;;  %v1168_v27 = vpop.permute.xlu0 %1167  ;;  %v1179_v33 = vsel %vm317_vm2, %v1172_v28, 0 }
  0xcd   : > { %1506 = vmatpush3.bf16.msra.mxu1 %v1075_v25  ;;  %v1173_v29 = vsel %vm1171_vm10, %v1166_v26, %v1168_v27  ;;  %1507 = vmatprep.mubr.msk.bf16.mxu1 %vm1674_vm0, %v1672_v5 }
  0xce   : > { %1437 = vmatprep.subr.msk.bf16.mxu0 %vm317_vm2, %v1173_v29  ;;  %v1170_v30 = vpop.permute.xlu1 %1169  ;;  %1511 = vmatprep.subr.bf16.mxu1 %v1672_v5 }
  0xcf   : > { %v1174_v31 = vsel %vm1171_vm10, %v1168_v27, %v1170_v30 }
  0xd0   : > { %v1185_v34 = vsel %vm317_vm2, %v1174_v31, 0 }
  0xd2   : > { %1434 = vmatmul.mubr.msk.bf16.vlgmr.msra.gmra.mrb[28].mxu0 %vm313_vm3, %v1432_v32 }
  0xd3   : > { %1188 = vmatpush1.bf16.msra.mxu0 %v1179_v33  ;;  %1219 = vmatprep.mubr.bf16.mxu0 %v1673_v6 }
  0xd4   : > { %1508 = vmatmul.mubr.msk.bf16.vlgmr.msra.gmra.mrb[28].mxu1 %vm313_vm3, %v1432_v32 }
  0xd5   : > { %1512 = vmatpush3.bf16.msra.mxu1 %v1185_v34  ;;  %1513 = vmatprep.mubr.msk.bf16.mxu1 %vm1674_vm0, %v1672_v5 }
  0xda   : > { %1438 = vmatmul.mubr.msk.bf16.vlgmr.msra.gmra.mrb[32].mxu0 %vm313_vm3, %v1436_v35 }
  0xdc   : > { %1514 = vmatmul.mubr.msk.bf16.vlgmr.msra.gmra.mrb[32].mxu1 %vm313_vm3, %v1436_v35 }
 0x16d   : > { %v361_v36 = vpop.f32.mrb[0].mxu0 }
 0x16e   : > { %v363_v37 = vpop.f32.mrb[1].mxu0 }
 0x16f   : > { %v365_v38 = vpop.f32.mrb[2].mxu0  ;;  %v402_v39 = vpop.f32.mrb[0].mxu1 }
 0x170   : > { %v366_v40 = vpop.f32.mrb[3].mxu0  ;;  %v1467_v6 = vpop.f32.mrb[1].mxu1 }
 0x171   : > { %v405_v41 = vpop.f32.mrb[2].mxu1 }
 0x172   : > { %v1468_v42 = vpop.f32.mrb[3].mxu1 }
 0x175   : > { %v454_v43 = vpop.f32.mrb[4].mxu0 }
 0x176   : > { %v455_v44 = vadd.f32 %v454_v43, %v361_v36  ;;  %v456_v45 = vpop.f32.mrb[5].mxu0 }
 0x177   : > { %v457_v5 = vadd.f32 %v456_v45, %v363_v37  ;;  %v458_v46 = vpop.f32.mrb[6].mxu0  ;;  %v495_v47 = vpop.f32.mrb[4].mxu1 }
 0x178   : > { %v496_v48 = vadd.f32 %v495_v47, %v402_v39  ;;  %v459_v49 = vpop.f32.mrb[7].mxu0  ;;  %v1473_v50 = vpop.f32.mrb[5].mxu1 }
 0x179   : > { %v498_v51 = vpop.f32.mrb[6].mxu1 }
 0x17a   : > { %v1474_v52 = vpop.f32.mrb[7].mxu1 }
 0x17d   : > { %v561_v53 = vpop.f32.mrb[8].mxu0 }
 0x17e   : > { %v608_v54 = vadd.f32 %v561_v53, %v455_v44  ;;  %v563_v55 = vpop.f32.mrb[9].mxu0 }
 0x17f   : > { %v609_v56 = vadd.f32 %v563_v55, %v457_v5  ;;  %v565_v57 = vpop.f32.mrb[10].mxu0  ;;  %v602_v58 = vpop.f32.mrb[8].mxu1 }
 0x180   : > { %v610_v59 = vadd.f32 %v602_v58, %v496_v48  ;;  %v566_v60 = vpop.f32.mrb[11].mxu0  ;;  %v1479_v61 = vpop.f32.mrb[9].mxu1 }
 0x181   : > { %v605_v62 = vpop.f32.mrb[10].mxu1 }
 0x182   : > { %v1480_v63 = vpop.f32.mrb[11].mxu1 }
 0x185   : > { %v671_v0 = vpop.f32.mrb[12].mxu0 }
 0x186   : > { %v718_v1 = vadd.f32 %v671_v0, %v608_v54  ;;  %v673_v2 = vpop.f32.mrb[13].mxu0 }
 0x187   : > { %v719_v3 = vadd.f32 %v673_v2, %v609_v56  ;;  %v675_v4 = vpop.f32.mrb[14].mxu0  ;;  %v712_v7 = vpop.f32.mrb[12].mxu1 }
 0x188   : > { %v720_v8 = vadd.f32 %v712_v7, %v610_v59  ;;  %v676_v9 = vpop.f32.mrb[15].mxu0  ;;  %v1485_v10 = vpop.f32.mrb[13].mxu1 }
 0x189   : > { %v715_v11 = vpop.f32.mrb[14].mxu1  ;;  %v1275_v56 = vpop.permute.xlu0 %1274 }
 0x18a   : > { %v1486_v12 = vpop.f32.mrb[15].mxu1 }
 0x18d   : > { %v781_v13 = vpop.f32.mrb[16].mxu0 }
 0x18e   : > { %v828_v14 = vadd.f32 %v781_v13, %v718_v1  ;;  %v783_v15 = vpop.f32.mrb[17].mxu0 }
 0x18f   : > { %v829_v16 = vadd.f32 %v783_v15, %v719_v3  ;;  %v785_v17 = vpop.f32.mrb[18].mxu0  ;;  %v822_v18 = vpop.f32.mrb[16].mxu1 }
 0x190   : > { %v830_v19 = vadd.f32 %v822_v18, %v720_v8  ;;  %v786_v20 = vpop.f32.mrb[19].mxu0  ;;  %v1491_v21 = vpop.f32.mrb[17].mxu1 }
 0x191   : > { %v825_v22 = vpop.f32.mrb[18].mxu1 }
 0x192   : > { %v1492_v23 = vpop.f32.mrb[19].mxu1 }
 0x195   : > { %v891_v24 = vpop.f32.mrb[20].mxu0 }
 0x196   : > { %v938_v25 = vadd.f32 %v891_v24, %v828_v14  ;;  %v893_v26 = vpop.f32.mrb[21].mxu0 }
 0x197   : > { %v939_v27 = vadd.f32 %v893_v26, %v829_v16  ;;  %v895_v28 = vpop.f32.mrb[22].mxu0  ;;  %v932_v29 = vpop.f32.mrb[20].mxu1 }
 0x198   : > { %v940_v30 = vadd.f32 %v932_v29, %v830_v19  ;;  %v896_v31 = vpop.f32.mrb[23].mxu0  ;;  %v1497_v32 = vpop.f32.mrb[21].mxu1 }
 0x199   : > { %v935_v33 = vpop.f32.mrb[22].mxu1 }
 0x19a   : > { %v1498_v34 = vpop.f32.mrb[23].mxu1 }
 0x19d   : > { %v1001_v35 = vpop.f32.mrb[24].mxu0 }
 0x19e   : > { %v1048_v36 = vadd.f32 %v1001_v35, %v938_v25  ;;  %v1003_v37 = vpop.f32.mrb[25].mxu0 }
 0x19f   : > { %v1049_v38 = vadd.f32 %v1003_v37, %v939_v27  ;;  %v1005_v39 = vpop.f32.mrb[26].mxu0  ;;  %v1042_v40 = vpop.f32.mrb[24].mxu1 }
 0x1a0   : > { %v1050_v6 = vadd.f32 %v1042_v40, %v940_v30  ;;  %v1006_v41 = vpop.f32.mrb[27].mxu0  ;;  %v1503_v42 = vpop.f32.mrb[25].mxu1 }
 0x1a1   : > { %v1045_v43 = vpop.f32.mrb[26].mxu1 }
 0x1a2   : > { %v1504_v44 = vpop.f32.mrb[27].mxu1 }
 0x1a5   : > { %v1111_v45 = vpop.f32.mrb[28].mxu0 }
 0x1a6   : > { %v1158_v5 = vadd.f32 %v1111_v45, %v1048_v36  ;;  %v1113_v46 = vpop.f32.mrb[29].mxu0 }
 0x1a7   : > { %v1159_v47 = vadd.f32 %v1113_v46, %v1049_v38  ;;  %v1115_v48 = vpop.f32.mrb[30].mxu0  ;;  %v1152_v49 = vpop.f32.mrb[28].mxu1 }
 0x1a8   : > { %v1160_v50 = vadd.f32 %v1152_v49, %v1050_v6  ;;  %v1116_v51 = vpop.f32.mrb[31].mxu0  ;;  %v1509_v52 = vpop.f32.mrb[29].mxu1 }
 0x1a9   : > { %v1155_v53 = vpop.f32.mrb[30].mxu1 }
 0x1aa   : > { %v1510_v54 = vpop.f32.mrb[31].mxu1 }
 0x1ad   : > { %v1221_v55 = vpop.f32.mrb[32].mxu0 }
 0x1ae   : > { %v1268_v57 = vadd.f32 %v1221_v55, %v1158_v5  ;;  %v1223_v58 = vpop.f32.mrb[33].mxu0 }
 0x1af   : > { %v1269_v59 = vadd.f32 %v1223_v58, %v1159_v47  ;;  %v1225_v60 = vpop.f32.mrb[34].mxu0  ;;  %v1262_v61 = vpop.f32.mrb[32].mxu1 }
 0x1b0   : > { %v1277_v62 = vadd.f32 %v1275_v56, %v1268_v57  ;;  %v1270_v63 = vadd.f32 %v1262_v61, %v1160_v50  ;;  %v1226_v0 = vpop.f32.mrb[35].mxu0  ;;  %v1515_v1 = vpop.f32.mrb[33].mxu1 }
 0x1b1   : > { %v1278_v2 = vadd.f32 %v1275_v56, %v1269_v59  ;;  %v1265_v3 = vpop.f32.mrb[34].mxu1 }
 0x1b2   : > { %v1280_v4 = vmax.f32 %v1277_v62, 0.0  ;;  %v1279_v7 = vadd.f32 %v1275_v56, %v1270_v63  ;;  %v1516_v8 = vpop.f32.mrb[35].mxu1 }
 0x1b3   : > { %v1281_v9 = vmax.f32 %v1278_v2, 0.0 }
 0x1b4   : > { %1283 = vst [vmem:[%s246_s11] sm:$0xff] %v1280_v4  ;;  %v1282_v10 = vmax.f32 %v1279_v7, 0.0 }
 0x1b5   : > { %1284 = vst [vmem:[%s246_s11 + $0x8] sm:$0xff] %v1281_v9 }
 0x1b6   : > { %1285 = vst [vmem:[%s246_s11 + $0x10] sm:$0xff] %v1282_v10 }
 0x1b7   : > { %1604 = shalt.err (!%p1601_p5)
}
 0x1b8   : > { %s1605_s30 = scalar_lea.hbm %s1915_s21, 384  ;;  %s1609_s7 = scalar_lea.hbm %s1968_s4, 768 }
 0x1b9   : > { %p1606_p6 = scmp.ne.s32.totalorder %s1915_s21, %s1605_s30  ;;  %p1610_p10 = scmp.lt.u32.totalorder %s1915_s21, %s1968_s4 }
 0x1ba   : > { %p1611_p11 = scmp.lt.u32.totalorder %s1609_s7, %s1605_s30  ;;  %p1613_p13 = scmp.lt.u32.totalorder %s1605_s30, %s1915_s21 }
 0x1bb   : > { %p1607_p7 = pnand %p1606_p6, %p1749_p4 }
 0x1bc   : > { %p1612_p12 = por %p1611_p11, %p1610_p10 }
 0x1bd   : > { %p1608_p9 = pneg %p1607_p7 }
 0x1be   : > { %p1614_p0 = por %p1613_p13, %p1612_p12 }
 0x1c0   : > { %p1615_p1 = pnand %p1614_p0, %p1608_p9 }
 0x1c2   : > { %1618 = shalt.err (!%p1615_p1)
}
 0x1c3   : > { %1521 = dma.vmem_to_hbm [thread:$0]  (%p1749_p4), %s1917_s12, 384, %s1915_s21, %s1287_s18  }
 0x1c4 PF: > { %p1528_p2 = scmp.ge.s32.totalorder %s1669_s20, 2  ;;  %s1315_s10 = sand.u32 1, %s1649_s15  }
 0x1c5   : > { %s1316_s11 = scalar_lea.sflag [#allocation3], %s1315_s10 }
 0x1c6   : > { %p1524_p3 = pnand %p1528_p2, %p1756_p8 }
 0x1c8   : > { %1644 = dma.done.wait (!%p1524_p3), %s1316_s11, 384  }
 0x1c9   : > { %1646 = vsyncadd (!%p1524_p3), %s1316_s11, 4294966912  ;;  %s17_s20 = sadd.s32 1, %s1669_s20   ;;  %s1971_s15 = smov %s1653_s16 }
 0x1ca   : > { %p14_p5 = scmp.ge.s32.totalorder %s17_s20, 4   ;;  %s1972_s16 = smov %s1657_s17 }
 0x1cb   : > { %s1973_s17 = smov %s1762_s28  ;;  %s1974_s18 = smov %s1665_s19 }
 0x1cc   : > { %s1975_s19 = smov %s1977_s23  ;;  %16 = sbr.rel (!%p14_p5) target bundleno = 4 (0x4), region = 82 }
 0x1d3   :  { %1321 = vsyncpa [#allocation3], 1 }
 0x1d4   :  { %1323 = vsyncpa [#allocation3 + $0x1], 1 }

// kernel: tpu_custom_call.1
= control target key start
LH: loop header
LB: loop body
LE: loop exit
PB: predicated region body
PF: predicated region fallthrough
CT: control target
= control target key end

     0   :  { %9 = vsyncpa [#allocation3], 0  ;;  %s1964_s0 = inlined_call_operand.vmem [shape: bf16[2,4,768], index: 0, kind: input, shape index: {}]   ;;  %s1965_s1 = inlined_call_operand.vmem [shape: bf16[2,4,768], index: 1, kind: input, shape index: {}]   ;;  %s1966_s2 = inlined_call_operand.vmem [shape: bf16[9,8,4], index: 2, kind: input, shape index: {}]   ;;  %s1967_s3 = inlined_call_operand.vmem [shape: f32[8,1], index: 3, kind: input, shape index: {}]   ;;  %s1968_s4 = inlined_call_operand.hbm [shape: f32[2,8,384], index: 4, kind: output, shape index: {}]  }
   0x1   :  { %11 = vsyncpa [#allocation3 + $0x1], 0  ;;  %s1709_s15 = smov 0   ;;  %s1711_s16 = smov 0  }
   0x2   :  { %s1713_s17 = smov 0   ;;  %s1715_s18 = smov 0  }
   0x3   :  { %s1717_s19 = smov 0   ;;  %s1719_s20 = smov 0  }
   0x4 LB: > { %s1397_s21 = sadd.s32 4294967295, %s1669_s20   ;;  %s1398_s22 = sadd.s32 4294967294, %s1669_s20   ;;  %s1669_s20 = sphi %s1719_s20, %s17_s20   ;;  %s1665_s19 = sphi %s1717_s19, %s1975_s19   ;;  %s1661_s18 = sphi %s1715_s18, %s1974_s18   ;;  %s1657_s17 = sphi %s1713_s17, %s1973_s17   ;;  %s1653_s16 = sphi %s1711_s16, %s1972_s16   ;;  %s1649_s15 = sphi %s1709_s15, %s1971_s15  }
   0x5   : > { %s29_s23 = sadd.s32 1, %s1665_s19  ;;  %s138_s24 = sadd.s32 1, %s1657_s17 }
   0x6   : > { %p31_p0 = scmp.ge.s32.totalorder %s29_s23, 2  ;;  %p148_p1 = scmp.ne.s32.totalorder %s1657_s17, %s1653_s16 }
   0x7   : > { %p149_p2 = scmp.eq.s32.totalorder %s1397_s21, 1  ;;  %p154_p3 = scmp.ne.s32.totalorder %s1653_s16, %s1649_s15 }
   0x8   : > { %s1977_s23 = smov (%p31_p0, %s29_s23), 0  ;;  %p155_p5 = scmp.eq.s32.totalorder %s1398_s22, 1 }
   0x9   : > { %p1749_p4 = por %p149_p2, %p148_p1  ;;  %s133_s26 = ssub.s32 %s1665_s19, %s1977_s23 }
   0xa   : > { %p1401_p6 = scmp.ge.s32.totalorder %s1669_s20, 1  ;;  %p136_p7 = scmp.eq.s32.totalorder %s133_s26, 0 }
   0xb   : > { %p1756_p8 = por %p155_p5, %p154_p3  ;;  %p207_p9 = scmp.lt.s32.totalorder %s1669_s20, 3 }
   0xc   : > { %s1762_s28 = scalar_select %p136_p7, %s1657_s17, %s138_s24  }
   0xd   : > { %p208_p10 = pnand %p1401_p6, %p207_p9 }
   0xe   : > { %p248_p11 = scmp.lt.s32.totalorder (!%p208_p10), %s1661_s18, 1  ;;  %v278_v0 = vlaneseq (!%p208_p10)  ;;  %v1671_v1 = vmov (!%p208_p10), 1983009808   ;;  %v1672_v5 = vmov (!%p208_p10), 0.0   ;;  %v1673_v6 = vmov (!%p208_p10), 0   ;;  %s1675_s9 = smov (!%p208_p10), 127  }
   0xf   : > { %211 = sbr.rel (%p208_p10) target bundleno = 452 (0x1c4), region = 36  ;;  %v276_v2 = vunpack.c.l.s4 (!%p208_p10), %v1671_v1  ;;  %1463 = vmatprep.subr.bf16.mxu1 (!%p208_p10), %v1672_v5  ;;  %359 = vmatprep.mubr.bf16.mxu0 (!%p208_p10), %v1673_v6  ;;  %vm1674_vm0 = vmmov (!%p208_p10), 0   ;;  %s1676_s13 = smov (!%p208_p10), 126   ;;  %v1271_v14 = vld [vmem:[%s1967_s3] sm:$0xff] (!%p208_p10)  ;;  %vm309_vm1 = vcmask (!%p208_p10), 1039360   ;;  %vm317_vm2 = vcmask (!%p208_p10), 1041408  }
  0x10   : > { %v279_v3 = vshrl.u32 (!%p208_p10), %v278_v0, 7  ;;  %1589 = vset.pattern.permute.xlu0 (!%p208_p10), %v1673_v6  ;;  %1465 = vmatprep.mubr.msk.bf16.mxu1 (!%p208_p10), %vm1674_vm0, %v1672_v5  ;;  %s1677_s14 = smov (!%p208_p10), 110   ;;  %s1678_s21 = smov (!%p208_p10), 109   ;;  %v1405_v23 = vld [vmem:[%s1966_s2 + $0x4] sm:$0xf] (!%p208_p10)  ;;  %vm313_vm3 = vcmask (!%p208_p10), 31744  }
  0x11   : > { %v277_v4 = vunpack.c.0.s8 (!%p208_p10), %v276_v2  ;;  %s1679_s22 = smov (!%p208_p10), 108   ;;  %s1680_s24 = smov (!%p208_p10), 92   ;;  %vm511_vm4 = vcmask (!%p208_p10), 1031168   ;;  %v298_v34 = vld [vmem:[%s1966_s2] sm:$0xf] (!%p208_p10)  ;;  %vm621_vm5 = vcmask (!%p208_p10), 900096  }
  0x12   : > { %s1681_s26 = smov (!%p208_p10), 91   ;;  %v1412_v44 = vld [vmem:[%s1966_s2 + $0x8] sm:$0xf] (!%p208_p10)  ;;  %vm731_vm6 = vcmask (!%p208_p10), 891904   ;;  %v1416_v54 = vld [vmem:[%s1966_s2 + $0xc] sm:$0xf] (!%p208_p10) }
  0x13   : > { %v280_v7 = vsub.s32 (!%p208_p10), %v277_v4, %v279_v3  ;;  %vm841_vm7 = vcmask (!%p208_p10), 883712   ;;  %v1420_v0 = vld [vmem:[%s1966_s2 + $0x10] sm:$0xf] (!%p208_p10)  ;;  %vm951_vm8 = vcmask (!%p208_p10), 752640   ;;  %vm1061_vm9 = vcmask (!%p208_p10), 744448   ;;  %s1520_s10 = smul.u32 (!%p208_p10), 384, %s1661_s18 }
  0x14   : > { %vm1171_vm10 = vcmask (!%p208_p10), 736256  }
  0x16   : > { %s249_s29 = scalar_select %p248_p11, %s1661_s18, 1 }
  0x18   : > { %s1518_s30 = smul.u32 12, %s249_s29  ;;  %s1682_s29 = smov 90  }
  0x1a   : > { %s255_s7 = scalar_lea.vmem %s1964_s0, %s1518_s30  ;;  %s1444_s8 = sadd.s32 6, %s1518_s30 }
  0x1b   : > { %v271_v8 = vld [vmem:[%s255_s7] sm:$0x3f]  ;;  %s266_s12 = scalar_lea.vmem %s1965_s1, %s1444_s8  ;;  %s244_s8 = sand.u32 1, %s1653_s16  }
  0x1c   : > { %v1774_v9 = vrot.slane %v271_v8, %v280_v7  ;;  %v274_v10 = vcombine.high %v271_v8, %v271_v8  ;;  %v1404_v13 = vld.sshfl [vmem:[%s266_s12] sm:$0x3f pattern:$0x76325410]  ;;  %s1287_s18 = scalar_lea.sflag [#allocation3], %s244_s8 }
  0x1e   : > { %301 = vrot.lane.b32.xlu0 %v1774_v9, %s1675_s9  ;;  %v1777_v11 = vrot.slane %v274_v10, %v280_v7  ;;  %v289_v12 = vcombine.high %v1774_v9, %v1774_v9  ;;  %v412_v26 = vsel %vm317_vm2, %v1774_v9, 0 }
  0x20   : > { %305 = vrot.lane.b32.xlu1 %v1777_v11, %s1675_s9  ;;  %v418_v28 = vsel %vm317_vm2, %v1777_v11, 0 }
  0x22   : > { %303 = vrot.lane.b32.xlu0 %v289_v12, %s1675_s9 }
  0x24   : > { %307 = vrot.lane.b32.xlu1 %v1404_v13, %s1675_s9  ;;  %s1517_s9 = smul.u32 24, %s244_s8 }
  0x26   : > { %503 = vrot.lane.b32.xlu0 %v1774_v9, %s1676_s13  ;;  %s246_s11 = scalar_lea.vmem [#allocation2], %s1517_s9 }
  0x27   : > { %s1303_s12 = sshll.u32 %s246_s11, 4  ;;  %s1917_s12 = int_to_ptr.vmem [resolvable:$true] %s1303_s12 }
  0x28   : > { %505 = vrot.lane.b32.xlu1 %v289_v12, %s1676_s13 }
  0x2a   : > { %507 = vrot.lane.b32.xlu0 %v1777_v11, %s1676_s13 }
  0x2c   : > { %509 = vrot.lane.b32.xlu1 %v1404_v13, %s1676_s13 }
  0x2e   : > { %613 = vrot.lane.b32.xlu0 %v1774_v9, %s1677_s14 }
  0x30   : > { %615 = vrot.lane.b32.xlu1 %v289_v12, %s1677_s14 }
  0x32   : > { %617 = vrot.lane.b32.xlu0 %v1777_v11, %s1677_s14 }
  0x34   : > { %619 = vrot.lane.b32.xlu1 %v1404_v13, %s1677_s14 }
  0x36   : > { %723 = vrot.lane.b32.xlu0 %v1774_v9, %s1678_s21 }
  0x38   : > { %725 = vrot.lane.b32.xlu1 %v289_v12, %s1678_s21 }
  0x3a   : > { %727 = vrot.lane.b32.xlu0 %v1777_v11, %s1678_s21 }
  0x3c   : > { %729 = vrot.lane.b32.xlu1 %v1404_v13, %s1678_s21  ;;  %s1915_s21 = scalar_lea.hbm %s1968_s4, %s1520_s10 }
  0x3e   : > { %833 = vrot.lane.b32.xlu0 %v1774_v9, %s1679_s22 }
  0x40   : > { %835 = vrot.lane.b32.xlu1 %v289_v12, %s1679_s22 }
  0x42   : > { %837 = vrot.lane.b32.xlu0 %v1777_v11, %s1679_s22 }
  0x44   : > { %839 = vrot.lane.b32.xlu1 %v1404_v13, %s1679_s22  ;;  %s1591_s22 = scalar_lea.vmem %s1917_s12, 384 }
  0x45   : > { %p1592_p12 = scmp.ne.s32.totalorder %s1917_s12, %s1591_s22 }
  0x46   : > { %943 = vrot.lane.b32.xlu0 %v1774_v9, %s1680_s24 }
  0x47   : > { %p1593_p13 = pnand %p1592_p12, %p1749_p4 }
  0x48   : > { %945 = vrot.lane.b32.xlu1 %v289_v12, %s1680_s24 }
  0x49   : > { %p1594_p0 = pneg %p1593_p13 }
  0x4a   : > { %947 = vrot.lane.b32.xlu0 %v1777_v11, %s1680_s24 }
  0x4c   : > { %949 = vrot.lane.b32.xlu1 %v1404_v13, %s1680_s24  ;;  %s1683_s24 = smov [#allocation2]  }
  0x4e   : > { %1053 = vrot.lane.b32.xlu0 %v1774_v9, %s1681_s26 }
  0x50   : > { %1055 = vrot.lane.b32.xlu1 %v289_v12, %s1681_s26 }
  0x52   : > { %1057 = vrot.lane.b32.xlu0 %v1777_v11, %s1681_s26 }
  0x54   : > { %1059 = vrot.lane.b32.xlu1 %v1404_v13, %s1681_s26  ;;  %s1595_s26 = sshll.u32 %s1683_s24, 4  ;;  %s1596_s26 = int_to_ptr.vmem [resolvable:$false] %s1595_s26 }
  0x55   : > { %p1598_p1 = scmp.lt.s32.totalorder %s1917_s12, %s1596_s26 }
  0x56   : > { %1163 = vrot.lane.b32.xlu0 %v1774_v9, %s1682_s29 }
  0x58   : > { %1165 = vrot.lane.b32.xlu1 %v289_v12, %s1682_s29 }
  0x5a   : > { %1167 = vrot.lane.b32.xlu0 %v1777_v11, %s1682_s29 }
  0x5c   : > { %1169 = vrot.lane.b32.xlu1 %v1404_v13, %s1682_s29  ;;  %s1597_s29 = scalar_lea.vmem %s1596_s26, 768 }
  0x5d   : > { %p1599_p2 = scmp.lt.s32.totalorder %s1597_s29, %s1591_s22 }
  0x5e   : > { %1274 = vperm.xlu0 %1589, %v1271_v14  }
  0x5f   : > { %p1600_p3 = por %p1599_p2, %p1598_p1 }
  0x61   : > { %p1601_p5 = pnand %p1600_p3, %p1594_p0 }
  0x90   : > { %v302_v15 = vpop.permute.xlu0 %301 }
  0x92   : > { %v306_v16 = vpop.permute.xlu1 %305 }
  0x94   : > { %v304_v17 = vpop.permute.xlu0 %303 }
  0x95   : > { %v311_v18 = vsel %vm309_vm1, %v304_v17, %v306_v16  ;;  %v310_v19 = vsel %vm309_vm1, %v302_v15, %v304_v17 }
  0x96   : > { %1406 = vmatprep.subr.msk.bf16.mxu0 %vm317_vm2, %v311_v18  ;;  %v308_v20 = vpop.permute.xlu1 %307  ;;  %v319_v21 = vsel %vm317_vm2, %v310_v19, 0 }
  0x97   : > { %328 = vmatpush1.bf16.msra.mxu0 %v319_v21  ;;  %v312_v22 = vsel %vm309_vm1, %v306_v16, %v308_v20 }
  0x98   : > { %v325_v24 = vsel %vm317_vm2, %v312_v22, 0  ;;  %v504_v25 = vpop.permute.xlu0 %503  ;;  %1409 = vmatprep.subr.msk.bf16.mxu0 %vm317_vm2, %v289_v12  ;;  %v1424_v12 = vld [vmem:[%s1966_s2 + $0x14] sm:$0xf]  ;;  %v1428_v22 = vld [vmem:[%s1966_s2 + $0x18] sm:$0xf] }
  0x99   : > { %1464 = vmatpush3.bf16.msra.mxu1 %v325_v24 }
  0x9a   : > { %1407 = vmatmul.mubr.msk.bf16.vlgmr.msra.gmra.mrb[0].mxu0 %vm313_vm3, %v1405_v23  ;;  %1469 = vmatprep.subr.bf16.mxu1 %v1672_v5  ;;  %v506_v27 = vpop.permute.xlu1 %505 }
  0x9b   : > { %421 = vmatpush1.bf16.msra.mxu0 %v412_v26  ;;  %452 = vmatprep.mubr.bf16.mxu0 %v1673_v6  ;;  %v512_v30 = vsel %vm511_vm4, %v504_v25, %v506_v27 }
  0x9c   : > { %1466 = vmatmul.mubr.msk.bf16.vlgmr.msra.gmra.mrb[0].mxu1 %vm313_vm3, %v1405_v23  ;;  %v508_v29 = vpop.permute.xlu0 %507  ;;  %v519_v35 = vsel %vm317_vm2, %v512_v30, 0 }
  0x9d   : > { %1470 = vmatpush3.bf16.msra.mxu1 %v418_v28  ;;  %v513_v31 = vsel %vm511_vm4, %v506_v27, %v508_v29  ;;  %1471 = vmatprep.mubr.msk.bf16.mxu1 %vm1674_vm0, %v1672_v5 }
  0x9e   : > { %1413 = vmatprep.subr.msk.bf16.mxu0 %vm317_vm2, %v513_v31  ;;  %v510_v32 = vpop.permute.xlu1 %509  ;;  %1475 = vmatprep.subr.bf16.mxu1 %v1672_v5 }
  0x9f   : > { %v514_v33 = vsel %vm511_vm4, %v508_v29, %v510_v32  ;;  %v1432_v32 = vld [vmem:[%s1966_s2 + $0x1c] sm:$0xf] }
  0xa0   : > { %v614_v36 = vpop.permute.xlu0 %613  ;;  %v525_v37 = vsel %vm317_vm2, %v514_v33, 0 }
  0xa2   : > { %1410 = vmatmul.mubr.msk.bf16.vlgmr.msra.gmra.mrb[4].mxu0 %vm313_vm3, %v298_v34  ;;  %v616_v38 = vpop.permute.xlu1 %615 }
  0xa3   : > { %528 = vmatpush1.bf16.msra.mxu0 %v519_v35  ;;  %559 = vmatprep.mubr.bf16.mxu0 %v1673_v6  ;;  %v622_v40 = vsel %vm621_vm5, %v614_v36, %v616_v38  ;;  %v1436_v35 = vld [vmem:[%s1966_s2 + $0x20] sm:$0xf] }
  0xa4   : > { %1472 = vmatmul.mubr.msk.bf16.vlgmr.msra.gmra.mrb[4].mxu1 %vm313_vm3, %v298_v34  ;;  %v618_v39 = vpop.permute.xlu0 %617  ;;  %v629_v45 = vsel %vm317_vm2, %v622_v40, 0 }
  0xa5   : > { %1476 = vmatpush3.bf16.msra.mxu1 %v525_v37  ;;  %v623_v41 = vsel %vm621_vm5, %v616_v38, %v618_v39  ;;  %1477 = vmatprep.mubr.msk.bf16.mxu1 %vm1674_vm0, %v1672_v5 }
  0xa6   : > { %1417 = vmatprep.subr.msk.bf16.mxu0 %vm317_vm2, %v623_v41  ;;  %v620_v42 = vpop.permute.xlu1 %619  ;;  %1481 = vmatprep.subr.bf16.mxu1 %v1672_v5 }
  0xa7   : > { %v624_v43 = vsel %vm621_vm5, %v618_v39, %v620_v42 }
  0xa8   : > { %v724_v46 = vpop.permute.xlu0 %723  ;;  %v635_v47 = vsel %vm317_vm2, %v624_v43, 0 }
  0xaa   : > { %1414 = vmatmul.mubr.msk.bf16.vlgmr.msra.gmra.mrb[8].mxu0 %vm313_vm3, %v1412_v44  ;;  %v726_v48 = vpop.permute.xlu1 %725 }
  0xab   : > { %638 = vmatpush1.bf16.msra.mxu0 %v629_v45  ;;  %669 = vmatprep.mubr.bf16.mxu0 %v1673_v6  ;;  %v732_v50 = vsel %vm731_vm6, %v724_v46, %v726_v48 }
  0xac   : > { %1478 = vmatmul.mubr.msk.bf16.vlgmr.msra.gmra.mrb[8].mxu1 %vm313_vm3, %v1412_v44  ;;  %v728_v49 = vpop.permute.xlu0 %727  ;;  %v739_v55 = vsel %vm317_vm2, %v732_v50, 0 }
  0xad   : > { %1482 = vmatpush3.bf16.msra.mxu1 %v635_v47  ;;  %v733_v51 = vsel %vm731_vm6, %v726_v48, %v728_v49  ;;  %1483 = vmatprep.mubr.msk.bf16.mxu1 %vm1674_vm0, %v1672_v5 }
  0xae   : > { %1421 = vmatprep.subr.msk.bf16.mxu0 %vm317_vm2, %v733_v51  ;;  %v730_v52 = vpop.permute.xlu1 %729  ;;  %1487 = vmatprep.subr.bf16.mxu1 %v1672_v5 }
  0xaf   : > { %v734_v53 = vsel %vm731_vm6, %v728_v49, %v730_v52 }
  0xb0   : > { %v834_v56 = vpop.permute.xlu0 %833  ;;  %v745_v57 = vsel %vm317_vm2, %v734_v53, 0 }
  0xb2   : > { %1418 = vmatmul.mubr.msk.bf16.vlgmr.msra.gmra.mrb[12].mxu0 %vm313_vm3, %v1416_v54  ;;  %v836_v58 = vpop.permute.xlu1 %835 }
  0xb3   : > { %748 = vmatpush1.bf16.msra.mxu0 %v739_v55  ;;  %779 = vmatprep.mubr.bf16.mxu0 %v1673_v6  ;;  %v842_v60 = vsel %vm841_vm7, %v834_v56, %v836_v58 }
  0xb4   : > { %1484 = vmatmul.mubr.msk.bf16.vlgmr.msra.gmra.mrb[12].mxu1 %vm313_vm3, %v1416_v54  ;;  %v838_v59 = vpop.permute.xlu0 %837  ;;  %v849_v1 = vsel %vm317_vm2, %v842_v60, 0 }
  0xb5   : > { %1488 = vmatpush3.bf16.msra.mxu1 %v745_v57  ;;  %v843_v61 = vsel %vm841_vm7, %v836_v58, %v838_v59  ;;  %1489 = vmatprep.mubr.msk.bf16.mxu1 %vm1674_vm0, %v1672_v5 }
  0xb6   : > { %1425 = vmatprep.subr.msk.bf16.mxu0 %vm317_vm2, %v843_v61  ;;  %v840_v62 = vpop.permute.xlu1 %839  ;;  %1493 = vmatprep.subr.bf16.mxu1 %v1672_v5 }
  0xb7   : > { %v844_v63 = vsel %vm841_vm7, %v838_v59, %v840_v62 }
  0xb8   : > { %v944_v2 = vpop.permute.xlu0 %943  ;;  %v855_v3 = vsel %vm317_vm2, %v844_v63, 0 }
  0xba   : > { %1422 = vmatmul.mubr.msk.bf16.vlgmr.msra.gmra.mrb[16].mxu0 %vm313_vm3, %v1420_v0  ;;  %v946_v4 = vpop.permute.xlu1 %945 }
  0xbb   : > { %858 = vmatpush1.bf16.msra.mxu0 %v849_v1  ;;  %889 = vmatprep.mubr.bf16.mxu0 %v1673_v6  ;;  %v952_v8 = vsel %vm951_vm8, %v944_v2, %v946_v4 }
  0xbc   : > { %1490 = vmatmul.mubr.msk.bf16.vlgmr.msra.gmra.mrb[16].mxu1 %vm313_vm3, %v1420_v0  ;;  %v948_v7 = vpop.permute.xlu0 %947  ;;  %v959_v13 = vsel %vm317_vm2, %v952_v8, 0 }
  0xbd   : > { %1494 = vmatpush3.bf16.msra.mxu1 %v855_v3  ;;  %v953_v9 = vsel %vm951_vm8, %v946_v4, %v948_v7  ;;  %1495 = vmatprep.mubr.msk.bf16.mxu1 %vm1674_vm0, %v1672_v5 }
  0xbe   : > { %1429 = vmatprep.subr.msk.bf16.mxu0 %vm317_vm2, %v953_v9  ;;  %v950_v10 = vpop.permute.xlu1 %949  ;;  %1499 = vmatprep.subr.bf16.mxu1 %v1672_v5 }
  0xbf   : > { %v954_v11 = vsel %vm951_vm8, %v948_v7, %v950_v10 }
  0xc0   : > { %v1054_v14 = vpop.permute.xlu0 %1053  ;;  %v965_v15 = vsel %vm317_vm2, %v954_v11, 0 }
  0xc2   : > { %1426 = vmatmul.mubr.msk.bf16.vlgmr.msra.gmra.mrb[20].mxu0 %vm313_vm3, %v1424_v12  ;;  %v1056_v16 = vpop.permute.xlu1 %1055 }
  0xc3   : > { %968 = vmatpush1.bf16.msra.mxu0 %v959_v13  ;;  %999 = vmatprep.mubr.bf16.mxu0 %v1673_v6  ;;  %v1062_v18 = vsel %vm1061_vm9, %v1054_v14, %v1056_v16 }
  0xc4   : > { %1496 = vmatmul.mubr.msk.bf16.vlgmr.msra.gmra.mrb[20].mxu1 %vm313_vm3, %v1424_v12  ;;  %v1058_v17 = vpop.permute.xlu0 %1057  ;;  %v1069_v23 = vsel %vm317_vm2, %v1062_v18, 0 }
  0xc5   : > { %1500 = vmatpush3.bf16.msra.mxu1 %v965_v15  ;;  %v1063_v19 = vsel %vm1061_vm9, %v1056_v16, %v1058_v17  ;;  %1501 = vmatprep.mubr.msk.bf16.mxu1 %vm1674_vm0, %v1672_v5 }
  0xc6   : > { %1433 = vmatprep.subr.msk.bf16.mxu0 %vm317_vm2, %v1063_v19  ;;  %v1060_v20 = vpop.permute.xlu1 %1059  ;;  %1505 = vmatprep.subr.bf16.mxu1 %v1672_v5 }
  0xc7   : > { %v1064_v21 = vsel %vm1061_vm9, %v1058_v17, %v1060_v20 }
  0xc8   : > { %v1164_v24 = vpop.permute.xlu0 %1163  ;;  %v1075_v25 = vsel %vm317_vm2, %v1064_v21, 0 }
  0xca   : > { %1430 = vmatmul.mubr.msk.bf16.vlgmr.msra.gmra.mrb[24].mxu0 %vm313_vm3, %v1428_v22  ;;  %v1166_v26 = vpop.permute.xlu1 %1165 }
  0xcb   : > { %1078 = vmatpush1.bf16.msra.mxu0 %v1069_v23  ;;  %1109 = vmatprep.mubr.bf16.mxu0 %v1673_v6  ;;  %v1172_v28 = vsel %vm1171_vm10, %v1164_v24, %v1166_v26 }
  0xcc   : > { %1502 = vmatmul.mubr.msk.bf16.vlgmr.msra.gmra.mrb[24].mxu1 %vm313_vm3, %v1428_v22  ;;  %v1168_v27 = vpop.permute.xlu0 %1167  ;;  %v1179_v33 = vsel %vm317_vm2, %v1172_v28, 0 }
  0xcd   : > { %1506 = vmatpush3.bf16.msra.mxu1 %v1075_v25  ;;  %v1173_v29 = vsel %vm1171_vm10, %v1166_v26, %v1168_v27  ;;  %1507 = vmatprep.mubr.msk.bf16.mxu1 %vm1674_vm0, %v1672_v5 }
  0xce   : > { %1437 = vmatprep.subr.msk.bf16.mxu0 %vm317_vm2, %v1173_v29  ;;  %v1170_v30 = vpop.permute.xlu1 %1169  ;;  %1511 = vmatprep.subr.bf16.mxu1 %v1672_v5 }
  0xcf   : > { %v1174_v31 = vsel %vm1171_vm10, %v1168_v27, %v1170_v30 }
  0xd0   : > { %v1185_v34 = vsel %vm317_vm2, %v1174_v31, 0 }
  0xd2   : > { %1434 = vmatmul.mubr.msk.bf16.vlgmr.msra.gmra.mrb[28].mxu0 %vm313_vm3, %v1432_v32 }
  0xd3   : > { %1188 = vmatpush1.bf16.msra.mxu0 %v1179_v33  ;;  %1219 = vmatprep.mubr.bf16.mxu0 %v1673_v6 }
  0xd4   : > { %1508 = vmatmul.mubr.msk.bf16.vlgmr.msra.gmra.mrb[28].mxu1 %vm313_vm3, %v1432_v32 }
  0xd5   : > { %1512 = vmatpush3.bf16.msra.mxu1 %v1185_v34  ;;  %1513 = vmatprep.mubr.msk.bf16.mxu1 %vm1674_vm0, %v1672_v5 }
  0xda   : > { %1438 = vmatmul.mubr.msk.bf16.vlgmr.msra.gmra.mrb[32].mxu0 %vm313_vm3, %v1436_v35 }
  0xdc   : > { %1514 = vmatmul.mubr.msk.bf16.vlgmr.msra.gmra.mrb[32].mxu1 %vm313_vm3, %v1436_v35 }
 0x16d   : > { %v361_v36 = vpop.f32.mrb[0].mxu0 }
 0x16e   : > { %v363_v37 = vpop.f32.mrb[1].mxu0 }
 0x16f   : > { %v365_v38 = vpop.f32.mrb[2].mxu0  ;;  %v402_v39 = vpop.f32.mrb[0].mxu1 }
 0x170   : > { %v366_v40 = vpop.f32.mrb[3].mxu0  ;;  %v1467_v6 = vpop.f32.mrb[1].mxu1 }
 0x171   : > { %v405_v41 = vpop.f32.mrb[2].mxu1 }
 0x172   : > { %v1468_v42 = vpop.f32.mrb[3].mxu1 }
 0x175   : > { %v454_v43 = vpop.f32.mrb[4].mxu0 }
 0x176   : > { %v455_v44 = vadd.f32 %v454_v43, %v361_v36  ;;  %v456_v45 = vpop.f32.mrb[5].mxu0 }
 0x177   : > { %v457_v5 = vadd.f32 %v456_v45, %v363_v37  ;;  %v458_v46 = vpop.f32.mrb[6].mxu0  ;;  %v495_v47 = vpop.f32.mrb[4].mxu1 }
 0x178   : > { %v496_v48 = vadd.f32 %v495_v47, %v402_v39  ;;  %v459_v49 = vpop.f32.mrb[7].mxu0  ;;  %v1473_v50 = vpop.f32.mrb[5].mxu1 }
 0x179   : > { %v498_v51 = vpop.f32.mrb[6].mxu1 }
 0x17a   : > { %v1474_v52 = vpop.f32.mrb[7].mxu1 }
 0x17d   : > { %v561_v53 = vpop.f32.mrb[8].mxu0 }
 0x17e   : > { %v608_v54 = vadd.f32 %v561_v53, %v455_v44  ;;  %v563_v55 = vpop.f32.mrb[9].mxu0 }
 0x17f   : > { %v609_v56 = vadd.f32 %v563_v55, %v457_v5  ;;  %v565_v57 = vpop.f32.mrb[10].mxu0  ;;  %v602_v58 = vpop.f32.mrb[8].mxu1 }
 0x180   : > { %v610_v59 = vadd.f32 %v602_v58, %v496_v48  ;;  %v566_v60 = vpop.f32.mrb[11].mxu0  ;;  %v1479_v61 = vpop.f32.mrb[9].mxu1 }
 0x181   : > { %v605_v62 = vpop.f32.mrb[10].mxu1 }
 0x182   : > { %v1480_v63 = vpop.f32.mrb[11].mxu1 }
 0x185   : > { %v671_v0 = vpop.f32.mrb[12].mxu0 }
 0x186   : > { %v718_v1 = vadd.f32 %v671_v0, %v608_v54  ;;  %v673_v2 = vpop.f32.mrb[13].mxu0 }
 0x187   : > { %v719_v3 = vadd.f32 %v673_v2, %v609_v56  ;;  %v675_v4 = vpop.f32.mrb[14].mxu0  ;;  %v712_v7 = vpop.f32.mrb[12].mxu1 }
 0x188   : > { %v720_v8 = vadd.f32 %v712_v7, %v610_v59  ;;  %v676_v9 = vpop.f32.mrb[15].mxu0  ;;  %v1485_v10 = vpop.f32.mrb[13].mxu1 }
 0x189   : > { %v715_v11 = vpop.f32.mrb[14].mxu1  ;;  %v1275_v56 = vpop.permute.xlu0 %1274 }
 0x18a   : > { %v1486_v12 = vpop.f32.mrb[15].mxu1 }
 0x18d   : > { %v781_v13 = vpop.f32.mrb[16].mxu0 }
 0x18e   : > { %v828_v14 = vadd.f32 %v781_v13, %v718_v1  ;;  %v783_v15 = vpop.f32.mrb[17].mxu0 }
 0x18f   : > { %v829_v16 = vadd.f32 %v783_v15, %v719_v3  ;;  %v785_v17 = vpop.f32.mrb[18].mxu0  ;;  %v822_v18 = vpop.f32.mrb[16].mxu1 }
 0x190   : > { %v830_v19 = vadd.f32 %v822_v18, %v720_v8  ;;  %v786_v20 = vpop.f32.mrb[19].mxu0  ;;  %v1491_v21 = vpop.f32.mrb[17].mxu1 }
 0x191   : > { %v825_v22 = vpop.f32.mrb[18].mxu1 }
 0x192   : > { %v1492_v23 = vpop.f32.mrb[19].mxu1 }
 0x195   : > { %v891_v24 = vpop.f32.mrb[20].mxu0 }
 0x196   : > { %v938_v25 = vadd.f32 %v891_v24, %v828_v14  ;;  %v893_v26 = vpop.f32.mrb[21].mxu0 }
 0x197   : > { %v939_v27 = vadd.f32 %v893_v26, %v829_v16  ;;  %v895_v28 = vpop.f32.mrb[22].mxu0  ;;  %v932_v29 = vpop.f32.mrb[20].mxu1 }
 0x198   : > { %v940_v30 = vadd.f32 %v932_v29, %v830_v19  ;;  %v896_v31 = vpop.f32.mrb[23].mxu0  ;;  %v1497_v32 = vpop.f32.mrb[21].mxu1 }
 0x199   : > { %v935_v33 = vpop.f32.mrb[22].mxu1 }
 0x19a   : > { %v1498_v34 = vpop.f32.mrb[23].mxu1 }
 0x19d   : > { %v1001_v35 = vpop.f32.mrb[24].mxu0 }
 0x19e   : > { %v1048_v36 = vadd.f32 %v1001_v35, %v938_v25  ;;  %v1003_v37 = vpop.f32.mrb[25].mxu0 }
 0x19f   : > { %v1049_v38 = vadd.f32 %v1003_v37, %v939_v27  ;;  %v1005_v39 = vpop.f32.mrb[26].mxu0  ;;  %v1042_v40 = vpop.f32.mrb[24].mxu1 }
 0x1a0   : > { %v1050_v6 = vadd.f32 %v1042_v40, %v940_v30  ;;  %v1006_v41 = vpop.f32.mrb[27].mxu0  ;;  %v1503_v42 = vpop.f32.mrb[25].mxu1 }
 0x1a1   : > { %v1045_v43 = vpop.f32.mrb[26].mxu1 }
 0x1a2   : > { %v1504_v44 = vpop.f32.mrb[27].mxu1 }
 0x1a5   : > { %v1111_v45 = vpop.f32.mrb[28].mxu0 }
 0x1a6   : > { %v1158_v5 = vadd.f32 %v1111_v45, %v1048_v36  ;;  %v1113_v46 = vpop.f32.mrb[29].mxu0 }
 0x1a7   : > { %v1159_v47 = vadd.f32 %v1113_v46, %v1049_v38  ;;  %v1115_v48 = vpop.f32.mrb[30].mxu0  ;;  %v1152_v49 = vpop.f32.mrb[28].mxu1 }
 0x1a8   : > { %v1160_v50 = vadd.f32 %v1152_v49, %v1050_v6  ;;  %v1116_v51 = vpop.f32.mrb[31].mxu0  ;;  %v1509_v52 = vpop.f32.mrb[29].mxu1 }
 0x1a9   : > { %v1155_v53 = vpop.f32.mrb[30].mxu1 }
 0x1aa   : > { %v1510_v54 = vpop.f32.mrb[31].mxu1 }
 0x1ad   : > { %v1221_v55 = vpop.f32.mrb[32].mxu0 }
 0x1ae   : > { %v1268_v57 = vadd.f32 %v1221_v55, %v1158_v5  ;;  %v1223_v58 = vpop.f32.mrb[33].mxu0 }
 0x1af   : > { %v1269_v59 = vadd.f32 %v1223_v58, %v1159_v47  ;;  %v1225_v60 = vpop.f32.mrb[34].mxu0  ;;  %v1262_v61 = vpop.f32.mrb[32].mxu1 }
 0x1b0   : > { %v1277_v62 = vadd.f32 %v1275_v56, %v1268_v57  ;;  %v1270_v63 = vadd.f32 %v1262_v61, %v1160_v50  ;;  %v1226_v0 = vpop.f32.mrb[35].mxu0  ;;  %v1515_v1 = vpop.f32.mrb[33].mxu1 }
 0x1b1   : > { %v1278_v2 = vadd.f32 %v1275_v56, %v1269_v59  ;;  %v1265_v3 = vpop.f32.mrb[34].mxu1 }
 0x1b2   : > { %v1280_v4 = vmax.f32 %v1277_v62, 0.0  ;;  %v1279_v7 = vadd.f32 %v1275_v56, %v1270_v63  ;;  %v1516_v8 = vpop.f32.mrb[35].mxu1 }
 0x1b3   : > { %v1281_v9 = vmax.f32 %v1278_v2, 0.0 }
 0x1b4   : > { %1283 = vst [vmem:[%s246_s11] sm:$0xff] %v1280_v4  ;;  %v1282_v10 = vmax.f32 %v1279_v7, 0.0 }
 0x1b5   : > { %1284 = vst [vmem:[%s246_s11 + $0x8] sm:$0xff] %v1281_v9 }
 0x1b6   : > { %1285 = vst [vmem:[%s246_s11 + $0x10] sm:$0xff] %v1282_v10 }
 0x1b7   : > { %1604 = shalt.err (!%p1601_p5)
}
 0x1b8   : > { %s1605_s30 = scalar_lea.hbm %s1915_s21, 384  ;;  %s1609_s7 = scalar_lea.hbm %s1968_s4, 768 }
 0x1b9   : > { %p1606_p6 = scmp.ne.s32.totalorder %s1915_s21, %s1605_s30  ;;  %p1610_p10 = scmp.lt.u32.totalorder %s1915_s21, %s1968_s4 }
 0x1ba   : > { %p1611_p11 = scmp.lt.u32.totalorder %s1609_s7, %s1605_s30  ;;  %p1613_p13 = scmp.lt.u32.totalorder %s1605_s30, %s1915_s21 }
 0x1bb   : > { %p1607_p7 = pnand %p1606_p6, %p1749_p4 }
 0x1bc   : > { %p1612_p12 = por %p1611_p11, %p1610_p10 }
 0x1bd   : > { %p1608_p9 = pneg %p1607_p7 }
 0x1be   : > { %p1614_p0 = por %p1613_p13, %p1612_p12 }
 0x1c0   : > { %p1615_p1 = pnand %p1614_p0, %p1608_p9 }
 0x1c2   : > { %1618 = shalt.err (!%p1615_p1)
}
 0x1c3   : > { %1521 = dma.vmem_to_hbm [thread:$0]  (%p1749_p4), %s1917_s12, 384, %s1915_s21, %s1287_s18  }
 0x1c4 PF: > { %p1528_p2 = scmp.ge.s32.totalorder %s1669_s20, 2  ;;  %s1315_s10 = sand.u32 1, %s1649_s15  }
 0x1c5   : > { %s1316_s11 = scalar_lea.sflag [#allocation3], %s1315_s10 }
 0x1c6   : > { %p1524_p3 = pnand %p1528_p2, %p1756_p8 }
 0x1c8   : > { %1644 = dma.done.wait (!%p1524_p3), %s1316_s11, 384  }
 0x1c9   : > { %1646 = vsyncadd (!%p1524_p3), %s1316_s11, 4294966912  ;;  %s17_s20 = sadd.s32 1, %s1669_s20   ;;  %s1971_s15 = smov %s1653_s16 }
 0x1ca   : > { %p14_p5 = scmp.ge.s32.totalorder %s17_s20, 4   ;;  %s1972_s16 = smov %s1657_s17 }
 0x1cb   : > { %s1973_s17 = smov %s1762_s28  ;;  %s1974_s18 = smov %s1665_s19 }
 0x1cc   : > { %s1975_s19 = smov %s1977_s23  ;;  %16 = sbr.rel (!%p14_p5) target bundleno = 4 (0x4), region = 82 }
 0x1d3   :  { %1321 = vsyncpa [#allocation3], 1 }
 0x1d4   :  { %1323 = vsyncpa [#allocation3 + $0x1], 1 }

</bundles_post_ra>
